<compile_context>
chip_gen: v6e
topology: v6e:2x2x1
jax: 0.10.0
libtpu: 0.0.40
codegen_flags: <defaults>
</compile_context>

<pallas_src>
import jax
import jax.numpy as jnp
from jax.experimental import pallas as pl
from jax.experimental.pallas import tpu as pltpu

# Small, module-consistent shapes.
N, C, H, W = 2, 8, 16, 16
OUT_C = C                 # out_channels=None -> == channels -> Identity skip
GROUPS = 4                # norm_groups (must divide channels)
EPS = 1e-5                # nn.GroupNorm default eps
NPAD = 8                  # padded per-sample-selector width (>= N, keeps matmuls >= 8 wide)


# ------------------------------- Pallas kernel ---------------------------------

def resblock_kernel(x_ref, masks_ref, sel_ref, selt_ref,
                    w1_ref, b1_ref, gm1_ref, g1_ref, be1_ref,
                    w2_ref, b2_ref, gm2_ref, g2_ref, be2_ref,
                    out_ref):
    n, c, hw = x_ref.shape
    cout = out_ref.shape[1]
    nhw = n * hw

    # Fold batch into the lane axis in-registers: (N, C, HW) -> (C, N*HW).
    # Aligned lane concat (hw = 256 is a multiple of 128) -> no wrapper transpose.
    x_all = jnp.concatenate([x_ref[b] for b in range(n)], axis=1).astype(jnp.float32)

    sel = sel_ref[...]        # (N*HW, NPAD): 0/1 per-sample selector (cols >= N are zero)
    selt = selt_ref[...]      # (NPAD, N*HW): its transpose (broadcast-back)

    def gn_silu(v, gm, gamma, beta):
        # Per-sample, per-group GroupNorm (biased var, two-pass) + SiLU on (C, N*HW).
        # Stats via tiny MXU matmuls: per-channel per-sample lane sums (v @ sel),
        # group combine (gm includes 1/(HW*c_per_group)), broadcast back (@ selT).
        s_cn = jnp.dot(v, sel, preferred_element_type=jnp.float32)            # (C, NPAD)
        mean = jnp.dot(jnp.dot(gm, s_cn, preferred_element_type=jnp.float32),
                       selt, preferred_element_type=jnp.float32)              # (C, N*HW)
        vc = v - mean
        q_cn = jnp.dot(vc * vc, sel, preferred_element_type=jnp.float32)      # (C, NPAD)
        var = jnp.dot(jnp.dot(gm, q_cn, preferred_element_type=jnp.float32),
                      selt, preferred_element_type=jnp.float32)               # (C, N*HW)
        y = vc * jax.lax.rsqrt(var + EPS) * gamma + beta
        return y * jax.nn.sigmoid(y)                                          # SiLU

    def conv3x3(v, w_mat, bias, cin):
        # im2col-in-registers: 9 lane rolls (XLU) masked by pre-broadcast boundary
        # masks, concatenated to (9*cin, N*HW), then ONE MXU matmul per conv.
        # NOTE: valid only for 3x3 / pad=1 / stride=1 -- the masks zero every tap that
        # wrapped across a row edge or across the batch seam.
        taps = []
        for t in range(9):
            dy, dx = t // 3 - 1, t % 3 - 1
            off = dy * W + dx                 # flat spatial offset of this tap
            shifted = v if off == 0 else pltpu.roll(v, shift=(-off) % nhw, axis=1)
            taps.append(shifted * masks_ref[t])
        col = jnp.concatenate(taps, axis=0)                                   # (9*cin, N*HW)
        return jnp.dot(w_mat, col, preferred_element_type=jnp.float32) + bias

    # in_layers: GroupNorm -> SiLU -> conv3x3
    a1 = gn_silu(x_all, gm1_ref[...], g1_ref[...], be1_ref[...])
    h1 = conv3x3(a1, w1_ref[...], b1_ref[...], c)

    # out_layers: GroupNorm -> SiLU -> Dropout -> conv3x3
    # TODO(synk): Dropout is identity at inference; training-mode RNG mask not implemented.
    a2 = gn_silu(h1, gm2_ref[...], g2_ref[...], be2_ref[...])
    h2 = conv3x3(a2, w2_ref[...], b2_ref[...], cout)

    # skip_connection = Identity (out_channels == channels); unfold batch back to (N, C, HW)
    res = x_all + h2
    for b in range(n):                        # aligned 256-lane slices -> dense stores
        out_ref[b] = res[:, b * hw:(b + 1) * hw].astype(out_ref.dtype)


# --------------------------------- wrapper -------------------------------------

def resblock_pallas(x_nchw, kp):
    n, c, h, w = x_nchw.shape
    cout = kp["w1"].shape[0]
    hw = h * w
    x3 = x_nchw.reshape(n, c, hw)             # NCHW -> (N, C, H*W): free reshape

    n_in = 14
    vmem_specs = [pl.BlockSpec(memory_space=pltpu.MemorySpace.VMEM)
                  for _ in range(n_in)]

    # Advisory cost hint for XLA's scheduler (convs dominate).
    flops = 2 * (2 * cout * 9 * c * n * hw)                 # two 3x3 convs as matmuls
    transcendentals = 4 * c * n * hw                        # sigmoid + rsqrt for two GNs
    bytes_accessed = 4 * int(x3.size + kp["masks"].size + kp["w1"].size
                             + kp["w2"].size + n * cout * hw)

    out = pl.pallas_call(
        resblock_kernel,
        out_shape=jax.ShapeDtypeStruct((n, cout, hw), jnp.float32),
        in_specs=vmem_specs,
        out_specs=pl.BlockSpec(memory_space=pltpu.MemorySpace.VMEM),
        compiler_params=pltpu.CompilerParams(vmem_limit_bytes=32 * 1024 * 1024),
        cost_estimate=pl.CostEstimate(flops=int(flops),
                                      transcendentals=int(transcendentals),
                                      bytes_accessed=bytes_accessed),
    )(x3, kp["masks"], kp["sel"], kp["selt"],
      kp["w1"], kp["b1"], kp["gm1"], kp["g1"], kp["be1"],
      kp["w2"], kp["b2"], kp["gm2"], kp["g2"], kp["be2"])

    return out.reshape(n, cout, h, w)         # back to NCHW: free reshape


# ------------------------------ pure-JAX reference ------------------------------

def resblock_ref(x, p):
    def gn(x, gamma, beta):
        n, c, hh, ww = x.shape
        xg = x.reshape(n, GROUPS, -1)
        m = xg.mean(axis=2, keepdims=True)
        v = ((xg - m) ** 2).mean(axis=2, keepdims=True)
        xn = ((xg - m) / jnp.sqrt(v + EPS)).reshape(n, c, hh, ww)
        return xn * gamma.reshape(1, c, 1, 1) + beta.reshape(1, c, 1, 1)

    def conv(x, w, b):
        y = jax.lax.conv_general_dilated(
            x, w, window_strides=(1, 1), padding=((1, 1), (1, 1)),
            dimension_numbers=("NCHW", "OIHW", "NCHW"))
        return y + b.reshape(1, -1, 1, 1)

    h1 = conv(jax.nn.silu(gn(x, p["g1"], p["be1"])), p["w1"], p["b1"])
    h2 = conv(jax.nn.silu(gn(h1, p["g2"], p["be2"])), p["w2"], p["b2"])
    return x + h2                                        # Identity skip


# ---------------------------- parameter preprocessing ---------------------------

def _group_matrix(c, groups, hw):
    # (C, C) group-averaging matrix including the 1/(HW * C_per_group) factor
    # (per-sample stats -> divide by the per-sample spatial size HW, not N*HW).
    cg = c // groups
    gid = jnp.arange(c) // cg
    m = (gid[:, None] == gid[None, :]).astype(jnp.float32)
    return m / float(hw * cg)


def _boundary_masks(n, c, h, w):
    # (9, C, N*HW) validity masks per 3x3 tap, tiled over batch and pre-broadcast
    # over channels (avoids in-kernel sublane broadcasts).
    yy, xx = jnp.meshgrid(jnp.arange(h), jnp.arange(w), indexing="ij")
    ms = []
    for ky in range(3):
        for kx in range(3):
            dy, dx = ky - 1, kx - 1
            valid = ((yy + dy >= 0) & (yy + dy < h) &
                     (xx + dx >= 0) & (xx + dx < w)).reshape(1, h * w)
            tiled = jnp.tile(valid.astype(jnp.float32), (1, n))     # (1, N*HW)
            ms.append(jnp.broadcast_to(tiled, (c, n * h * w)))
    return jnp.stack(ms, axis=0)


def _sample_selector(n, hw, npad):
    # sel[p, b] = 1 iff lane p belongs to sample b (columns >= n are zero padding).
    lane = jnp.arange(n * hw)
    sel = (lane[:, None] // hw == jnp.arange(npad)[None, :]).astype(jnp.float32)
    return sel, sel.T                          # (N*HW, NPAD), (NPAD, N*HW)


# ----------------------------------- main ---------------------------------------

if __name__ == "__main__":
    key = jax.random.PRNGKey(0)
    ks = jax.random.split(key, 9)

    x = jax.random.normal(ks[0], (N, C, H, W), jnp.float32)

    # Deterministic synthetic parameters (PyTorch-convention shapes).
    raw = {
        "w1": 0.1 * jax.random.normal(ks[1], (OUT_C, C, 3, 3), jnp.float32),
        "b1": 0.1 * jax.random.normal(ks[2], (OUT_C,), jnp.float32),
        "g1": 1.0 + 0.1 * jax.random.normal(ks[3], (C,), jnp.float32),
        "be1": 0.1 * jax.random.normal(ks[4], (C,), jnp.float32),
        "w2": 0.1 * jax.random.normal(ks[5], (OUT_C, OUT_C, 3, 3), jnp.float32),
        "b2": 0.1 * jax.random.normal(ks[6], (OUT_C,), jnp.float32),
        "g2": 1.0 + 0.1 * jax.random.normal(ks[7], (OUT_C,), jnp.float32),
        "be2": 0.1 * jax.random.normal(ks[8], (OUT_C,), jnp.float32),
    }

    # Kernel-layout parameters:
    #   conv weight as a single (Cout, 9*Cin) matrix whose column order matches the
    #   im2col row order r = (ky*3+kx)*Cin + ci; per-channel vectors as (C, 1) columns
    #   (channels on sublanes); group-averaging matrices; batch-tiled, channel-broadcast
    #   3x3 boundary masks; per-sample lane selectors.
    sel, selt = _sample_selector(N, H * W, NPAD)
    kp = {
        "w1": jnp.transpose(raw["w1"], (0, 2, 3, 1)).reshape(OUT_C, 9 * C),
        "b1": raw["b1"].reshape(OUT_C, 1),
        "g1": raw["g1"].reshape(C, 1),
        "be1": raw["be1"].reshape(C, 1),
        "gm1": _group_matrix(C, GROUPS, H * W),
        "w2": jnp.transpose(raw["w2"], (0, 2, 3, 1)).reshape(OUT_C, 9 * OUT_C),
        "b2": raw["b2"].reshape(OUT_C, 1),
        "g2": raw["g2"].reshape(OUT_C, 1),
        "be2": raw["be2"].reshape(OUT_C, 1),
        "gm2": _group_matrix(OUT_C, GROUPS, H * W),
        "masks": _boundary_masks(N, max(C, OUT_C), H, W),
        "sel": sel,
        "selt": selt,
    }

    out = jax.block_until_ready(resblock_pallas(x, kp))
    ref = jax.block_until_ready(resblock_ref(x, raw))

    assert out.shape == (N, OUT_C, H, W)
    assert jnp.allclose(out, ref, rtol=1e-4, atol=1e-4), (
        f"max abs err {jnp.max(jnp.abs(out - ref))}")
    print("KERNEL_OK")
</pallas_src>

<mosaic_0001>
module attributes {stable_mosaic.version = 11 : i64} {
  func.func @resblock_kernel(%arg0: memref<2x8x256xf32, #tpu.memory_space<vmem>>, %arg1: memref<9x8x512xf32, #tpu.memory_space<vmem>>, %arg2: memref<512x8xf32, #tpu.memory_space<vmem>>, %arg3: memref<8x512xf32, #tpu.memory_space<vmem>>, %arg4: memref<8x72xf32, #tpu.memory_space<vmem>>, %arg5: memref<8x1xf32, #tpu.memory_space<vmem>>, %arg6: memref<8x8xf32, #tpu.memory_space<vmem>>, %arg7: memref<8x1xf32, #tpu.memory_space<vmem>>, %arg8: memref<8x1xf32, #tpu.memory_space<vmem>>, %arg9: memref<8x72xf32, #tpu.memory_space<vmem>>, %arg10: memref<8x1xf32, #tpu.memory_space<vmem>>, %arg11: memref<8x8xf32, #tpu.memory_space<vmem>>, %arg12: memref<8x1xf32, #tpu.memory_space<vmem>>, %arg13: memref<8x1xf32, #tpu.memory_space<vmem>>, %arg14: memref<2x8x256xf32, #tpu.memory_space<vmem>>) attributes {dimension_semantics = [], scalar_prefetch = 0 : i64, scratch_operands = 0 : i64, tpu.core_type = #tpu.core_type<tc>} {
    %c0 = arith.constant 0 : index
    %c0_0 = arith.constant 0 : index
    %c0_1 = arith.constant 0 : index
    %0 = vector.load %arg0[%c0, %c0_0, %c0_1] : memref<2x8x256xf32, #tpu.memory_space<vmem>>, vector<1x8x256xf32>
    %1 = vector.shape_cast %0 : vector<1x8x256xf32> to vector<8x256xf32>
    %c1 = arith.constant 1 : index
    %c0_2 = arith.constant 0 : index
    %c0_3 = arith.constant 0 : index
    %2 = vector.load %arg0[%c1, %c0_2, %c0_3] : memref<2x8x256xf32, #tpu.memory_space<vmem>>, vector<1x8x256xf32>
    %3 = vector.shape_cast %2 : vector<1x8x256xf32> to vector<8x256xf32>
    %4 = tpu.concatenate %1, %3 in 1 : vector<8x256xf32>, vector<8x256xf32> -> vector<8x512xf32>
    %c0_4 = arith.constant 0 : index
    %c0_5 = arith.constant 0 : index
    %5 = vector.load %arg2[%c0_4, %c0_5] : memref<512x8xf32, #tpu.memory_space<vmem>>, vector<512x8xf32>
    %c0_6 = arith.constant 0 : index
    %c0_7 = arith.constant 0 : index
    %6 = vector.load %arg3[%c0_6, %c0_7] : memref<8x512xf32, #tpu.memory_space<vmem>>, vector<8x512xf32>
    %c0_8 = arith.constant 0 : index
    %c0_9 = arith.constant 0 : index
    %7 = vector.load %arg6[%c0_8, %c0_9] : memref<8x8xf32, #tpu.memory_space<vmem>>, vector<8x8xf32>
    %c0_10 = arith.constant 0 : index
    %c0_11 = arith.constant 0 : index
    %8 = vector.load %arg7[%c0_10, %c0_11] : memref<8x1xf32, #tpu.memory_space<vmem>>, vector<8x1xf32>
    %c0_12 = arith.constant 0 : index
    %c0_13 = arith.constant 0 : index
    %9 = vector.load %arg8[%c0_12, %c0_13] : memref<8x1xf32, #tpu.memory_space<vmem>>, vector<8x1xf32>
    %cst = arith.constant dense<0.000000e+00> : vector<8x8xf32>
    %10 = tpu.matmul %4, %5, %cst {dimension_numbers = #tpu.dot_dimension_numbers<[1], [0], [0], [1], [0, 0, 1, 1], [], []>} : vector<8x512xf32>, vector<512x8xf32>, vector<8x8xf32> -> vector<8x8xf32>
    %cst_14 = arith.constant dense<0.000000e+00> : vector<8x8xf32>
    %11 = tpu.matmul %7, %10, %cst_14 {dimension_numbers = #tpu.dot_dimension_numbers<[1], [0], [0], [1], [0, 0, 1, 1], [], []>} : vector<8x8xf32>, vector<8x8xf32>, vector<8x8xf32> -> vector<8x8xf32>
    %cst_15 = arith.constant dense<0.000000e+00> : vector<8x512xf32>
    %12 = tpu.matmul %11, %6, %cst_15 {dimension_numbers = #tpu.dot_dimension_numbers<[1], [0], [0], [1], [0, 0, 1, 1], [], []>} : vector<8x8xf32>, vector<8x512xf32>, vector<8x512xf32> -> vector<8x512xf32>
    %13 = arith.subf %4, %12 : vector<8x512xf32>
    %14 = arith.mulf %13, %13 : vector<8x512xf32>
    %cst_16 = arith.constant dense<0.000000e+00> : vector<8x8xf32>
    %15 = tpu.matmul %14, %5, %cst_16 {dimension_numbers = #tpu.dot_dimension_numbers<[1], [0], [0], [1], [0, 0, 1, 1], [], []>} : vector<8x512xf32>, vector<512x8xf32>, vector<8x8xf32> -> vector<8x8xf32>
    %cst_17 = arith.constant dense<0.000000e+00> : vector<8x8xf32>
    %16 = tpu.matmul %7, %15, %cst_17 {dimension_numbers = #tpu.dot_dimension_numbers<[1], [0], [0], [1], [0, 0, 1, 1], [], []>} : vector<8x8xf32>, vector<8x8xf32>, vector<8x8xf32> -> vector<8x8xf32>
    %cst_18 = arith.constant dense<0.000000e+00> : vector<8x512xf32>
    %17 = tpu.matmul %16, %6, %cst_18 {dimension_numbers = #tpu.dot_dimension_numbers<[1], [0], [0], [1], [0, 0, 1, 1], [], []>} : vector<8x8xf32>, vector<8x512xf32>, vector<8x512xf32> -> vector<8x512xf32>
    %cst_19 = arith.constant 9.99999974E-6 : f32
    %18 = vector.broadcast %cst_19 : f32 to vector<8x512xf32>
    %19 = arith.addf %17, %18 : vector<8x512xf32>
    %20 = math.rsqrt %19 : vector<8x512xf32>
    %21 = arith.mulf %13, %20 : vector<8x512xf32>
    %22 = vector.broadcast %8 : vector<8x1xf32> to vector<8x512xf32>
    %23 = arith.mulf %21, %22 : vector<8x512xf32>
    %24 = vector.broadcast %9 : vector<8x1xf32> to vector<8x512xf32>
    %25 = arith.addf %23, %24 : vector<8x512xf32>
    %26 = arith.negf %25 : vector<8x512xf32>
    %27 = math.exp %26 : vector<8x512xf32>
    %cst_20 = arith.constant 1.000000e+00 : f32
    %28 = vector.broadcast %cst_20 : f32 to vector<8x512xf32>
    %29 = arith.addf %28, %27 : vector<8x512xf32>
    %30 = arith.divf %28, %29 : vector<8x512xf32>
    %31 = arith.mulf %25, %30 : vector<8x512xf32>
    %c0_21 = arith.constant 0 : index
    %c0_22 = arith.constant 0 : index
    %32 = vector.load %arg4[%c0_21, %c0_22] : memref<8x72xf32, #tpu.memory_space<vmem>>, vector<8x72xf32>
    %c0_23 = arith.constant 0 : index
    %c0_24 = arith.constant 0 : index
    %33 = vector.load %arg5[%c0_23, %c0_24] : memref<8x1xf32, #tpu.memory_space<vmem>>, vector<8x1xf32>
    %c17_i32 = arith.constant 17 : i32
    %34 = tpu.dynamic_rotate %31 by %c17_i32 dim 1 : vector<8x512xf32>, i32 -> vector<8x512xf32>
    %c0_25 = arith.constant 0 : index
    %c0_26 = arith.constant 0 : index
    %c0_27 = arith.constant 0 : index
    %35 = vector.load %arg1[%c0_25, %c0_26, %c0_27] : memref<9x8x512xf32, #tpu.memory_space<vmem>>, vector<1x8x512xf32>
    %36 = vector.shape_cast %35 : vector<1x8x512xf32> to vector<8x512xf32>
    %37 = arith.mulf %34, %36 : vector<8x512xf32>
    %c16_i32 = arith.constant 16 : i32
    %38 = tpu.dynamic_rotate %31 by %c16_i32 dim 1 : vector<8x512xf32>, i32 -> vector<8x512xf32>
    %c1_28 = arith.constant 1 : index
    %c0_29 = arith.constant 0 : index
    %c0_30 = arith.constant 0 : index
    %39 = vector.load %arg1[%c1_28, %c0_29, %c0_30] : memref<9x8x512xf32, #tpu.memory_space<vmem>>, vector<1x8x512xf32>
    %40 = vector.shape_cast %39 : vector<1x8x512xf32> to vector<8x512xf32>
    %41 = arith.mulf %38, %40 : vector<8x512xf32>
    %c15_i32 = arith.constant 15 : i32
    %42 = tpu.dynamic_rotate %31 by %c15_i32 dim 1 : vector<8x512xf32>, i32 -> vector<8x512xf32>
    %c2 = arith.constant 2 : index
    %c0_31 = arith.constant 0 : index
    %c0_32 = arith.constant 0 : index
    %43 = vector.load %arg1[%c2, %c0_31, %c0_32] : memref<9x8x512xf32, #tpu.memory_space<vmem>>, vector<1x8x512xf32>
    %44 = vector.shape_cast %43 : vector<1x8x512xf32> to vector<8x512xf32>
    %45 = arith.mulf %42, %44 : vector<8x512xf32>
    %c1_i32 = arith.constant 1 : i32
    %46 = tpu.dynamic_rotate %31 by %c1_i32 dim 1 : vector<8x512xf32>, i32 -> vector<8x512xf32>
    %c3 = arith.constant 3 : index
    %c0_33 = arith.constant 0 : index
    %c0_34 = arith.constant 0 : index
    %47 = vector.load %arg1[%c3, %c0_33, %c0_34] : memref<9x8x512xf32, #tpu.memory_space<vmem>>, vector<1x8x512xf32>
    %48 = vector.shape_cast %47 : vector<1x8x512xf32> to vector<8x512xf32>
    %49 = arith.mulf %46, %48 : vector<8x512xf32>
    %c4 = arith.constant 4 : index
    %c0_35 = arith.constant 0 : index
    %c0_36 = arith.constant 0 : index
    %50 = vector.load %arg1[%c4, %c0_35, %c0_36] : memref<9x8x512xf32, #tpu.memory_space<vmem>>, vector<1x8x512xf32>
    %51 = vector.shape_cast %50 : vector<1x8x512xf32> to vector<8x512xf32>
    %52 = arith.mulf %31, %51 : vector<8x512xf32>
    %c511_i32 = arith.constant 511 : i32
    %53 = tpu.dynamic_rotate %31 by %c511_i32 dim 1 : vector<8x512xf32>, i32 -> vector<8x512xf32>
    %c5 = arith.constant 5 : index
    %c0_37 = arith.constant 0 : index
    %c0_38 = arith.constant 0 : index
    %54 = vector.load %arg1[%c5, %c0_37, %c0_38] : memref<9x8x512xf32, #tpu.memory_space<vmem>>, vector<1x8x512xf32>
    %55 = vector.shape_cast %54 : vector<1x8x512xf32> to vector<8x512xf32>
    %56 = arith.mulf %53, %55 : vector<8x512xf32>
    %c497_i32 = arith.constant 497 : i32
    %57 = tpu.dynamic_rotate %31 by %c497_i32 dim 1 : vector<8x512xf32>, i32 -> vector<8x512xf32>
    %c6 = arith.constant 6 : index
    %c0_39 = arith.constant 0 : index
    %c0_40 = arith.constant 0 : index
    %58 = vector.load %arg1[%c6, %c0_39, %c0_40] : memref<9x8x512xf32, #tpu.memory_space<vmem>>, vector<1x8x512xf32>
    %59 = vector.shape_cast %58 : vector<1x8x512xf32> to vector<8x512xf32>
    %60 = arith.mulf %57, %59 : vector<8x512xf32>
    %c496_i32 = arith.constant 496 : i32
    %61 = tpu.dynamic_rotate %31 by %c496_i32 dim 1 : vector<8x512xf32>, i32 -> vector<8x512xf32>
    %c7 = arith.constant 7 : index
    %c0_41 = arith.constant 0 : index
    %c0_42 = arith.constant 0 : index
    %62 = vector.load %arg1[%c7, %c0_41, %c0_42] : memref<9x8x512xf32, #tpu.memory_space<vmem>>, vector<1x8x512xf32>
    %63 = vector.shape_cast %62 : vector<1x8x512xf32> to vector<8x512xf32>
    %64 = arith.mulf %61, %63 : vector<8x512xf32>
    %c495_i32 = arith.constant 495 : i32
    %65 = tpu.dynamic_rotate %31 by %c495_i32 dim 1 : vector<8x512xf32>, i32 -> vector<8x512xf32>
    %c8 = arith.constant 8 : index
    %c0_43 = arith.constant 0 : index
    %c0_44 = arith.constant 0 : index
    %66 = vector.load %arg1[%c8, %c0_43, %c0_44] : memref<9x8x512xf32, #tpu.memory_space<vmem>>, vector<1x8x512xf32>
    %67 = vector.shape_cast %66 : vector<1x8x512xf32> to vector<8x512xf32>
    %68 = arith.mulf %65, %67 : vector<8x512xf32>
    %69 = tpu.concatenate %37, %41, %45, %49, %52, %56, %60, %64, %68 in 0 : vector<8x512xf32>, vector<8x512xf32>, vector<8x512xf32>, vector<8x512xf32>, vector<8x512xf32>, vector<8x512xf32>, vector<8x512xf32>, vector<8x512xf32>, vector<8x512xf32> -> vector<72x512xf32>
    %cst_45 = arith.constant dense<0.000000e+00> : vector<8x512xf32>
    %70 = tpu.matmul %32, %69, %cst_45 {dimension_numbers = #tpu.dot_dimension_numbers<[1], [0], [0], [1], [0, 0, 1, 1], [], []>} : vector<8x72xf32>, vector<72x512xf32>, vector<8x512xf32> -> vector<8x512xf32>
    %71 = vector.broadcast %33 : vector<8x1xf32> to vector<8x512xf32>
    %72 = arith.addf %70, %71 : vector<8x512xf32>
    %c0_46 = arith.constant 0 : index
    %c0_47 = arith.constant 0 : index
    %73 = vector.load %arg11[%c0_46, %c0_47] : memref<8x8xf32, #tpu.memory_space<vmem>>, vector<8x8xf32>
    %c0_48 = arith.constant 0 : index
    %c0_49 = arith.constant 0 : index
    %74 = vector.load %arg12[%c0_48, %c0_49] : memref<8x1xf32, #tpu.memory_space<vmem>>, vector<8x1xf32>
    %c0_50 = arith.constant 0 : index
    %c0_51 = arith.constant 0 : index
    %75 = vector.load %arg13[%c0_50, %c0_51] : memref<8x1xf32, #tpu.memory_space<vmem>>, vector<8x1xf32>
    %cst_52 = arith.constant dense<0.000000e+00> : vector<8x8xf32>
    %76 = tpu.matmul %72, %5, %cst_52 {dimension_numbers = #tpu.dot_dimension_numbers<[1], [0], [0], [1], [0, 0, 1, 1], [], []>} : vector<8x512xf32>, vector<512x8xf32>, vector<8x8xf32> -> vector<8x8xf32>
    %cst_53 = arith.constant dense<0.000000e+00> : vector<8x8xf32>
    %77 = tpu.matmul %73, %76, %cst_53 {dimension_numbers = #tpu.dot_dimension_numbers<[1], [0], [0], [1], [0, 0, 1, 1], [], []>} : vector<8x8xf32>, vector<8x8xf32>, vector<8x8xf32> -> vector<8x8xf32>
    %cst_54 = arith.constant dense<0.000000e+00> : vector<8x512xf32>
    %78 = tpu.matmul %77, %6, %cst_54 {dimension_numbers = #tpu.dot_dimension_numbers<[1], [0], [0], [1], [0, 0, 1, 1], [], []>} : vector<8x8xf32>, vector<8x512xf32>, vector<8x512xf32> -> vector<8x512xf32>
    %79 = arith.subf %72, %78 : vector<8x512xf32>
    %80 = arith.mulf %79, %79 : vector<8x512xf32>
    %cst_55 = arith.constant dense<0.000000e+00> : vector<8x8xf32>
    %81 = tpu.matmul %80, %5, %cst_55 {dimension_numbers = #tpu.dot_dimension_numbers<[1], [0], [0], [1], [0, 0, 1, 1], [], []>} : vector<8x512xf32>, vector<512x8xf32>, vector<8x8xf32> -> vector<8x8xf32>
    %cst_56 = arith.constant dense<0.000000e+00> : vector<8x8xf32>
    %82 = tpu.matmul %73, %81, %cst_56 {dimension_numbers = #tpu.dot_dimension_numbers<[1], [0], [0], [1], [0, 0, 1, 1], [], []>} : vector<8x8xf32>, vector<8x8xf32>, vector<8x8xf32> -> vector<8x8xf32>
    %cst_57 = arith.constant dense<0.000000e+00> : vector<8x512xf32>
    %83 = tpu.matmul %82, %6, %cst_57 {dimension_numbers = #tpu.dot_dimension_numbers<[1], [0], [0], [1], [0, 0, 1, 1], [], []>} : vector<8x8xf32>, vector<8x512xf32>, vector<8x512xf32> -> vector<8x512xf32>
    %cst_58 = arith.constant 9.99999974E-6 : f32
    %84 = vector.broadcast %cst_58 : f32 to vector<8x512xf32>
    %85 = arith.addf %83, %84 : vector<8x512xf32>
    %86 = math.rsqrt %85 : vector<8x512xf32>
    %87 = arith.mulf %79, %86 : vector<8x512xf32>
    %88 = vector.broadcast %74 : vector<8x1xf32> to vector<8x512xf32>
    %89 = arith.mulf %87, %88 : vector<8x512xf32>
    %90 = vector.broadcast %75 : vector<8x1xf32> to vector<8x512xf32>
    %91 = arith.addf %89, %90 : vector<8x512xf32>
    %92 = arith.negf %91 : vector<8x512xf32>
    %93 = math.exp %92 : vector<8x512xf32>
    %cst_59 = arith.constant 1.000000e+00 : f32
    %94 = vector.broadcast %cst_59 : f32 to vector<8x512xf32>
    %95 = arith.addf %94, %93 : vector<8x512xf32>
    %96 = arith.divf %94, %95 : vector<8x512xf32>
    %97 = arith.mulf %91, %96 : vector<8x512xf32>
    %c0_60 = arith.constant 0 : index
    %c0_61 = arith.constant 0 : index
    %98 = vector.load %arg9[%c0_60, %c0_61] : memref<8x72xf32, #tpu.memory_space<vmem>>, vector<8x72xf32>
    %c0_62 = arith.constant 0 : index
    %c0_63 = arith.constant 0 : index
    %99 = vector.load %arg10[%c0_62, %c0_63] : memref<8x1xf32, #tpu.memory_space<vmem>>, vector<8x1xf32>
    %c17_i32_64 = arith.constant 17 : i32
    %100 = tpu.dynamic_rotate %97 by %c17_i32_64 dim 1 : vector<8x512xf32>, i32 -> vector<8x512xf32>
    %c0_65 = arith.constant 0 : index
    %c0_66 = arith.constant 0 : index
    %c0_67 = arith.constant 0 : index
    %101 = vector.load %arg1[%c0_65, %c0_66, %c0_67] : memref<9x8x512xf32, #tpu.memory_space<vmem>>, vector<1x8x512xf32>
    %102 = vector.shape_cast %101 : vector<1x8x512xf32> to vector<8x512xf32>
    %103 = arith.mulf %100, %102 : vector<8x512xf32>
    %c16_i32_68 = arith.constant 16 : i32
    %104 = tpu.dynamic_rotate %97 by %c16_i32_68 dim 1 : vector<8x512xf32>, i32 -> vector<8x512xf32>
    %c1_69 = arith.constant 1 : index
    %c0_70 = arith.constant 0 : index
    %c0_71 = arith.constant 0 : index
    %105 = vector.load %arg1[%c1_69, %c0_70, %c0_71] : memref<9x8x512xf32, #tpu.memory_space<vmem>>, vector<1x8x512xf32>
    %106 = vector.shape_cast %105 : vector<1x8x512xf32> to vector<8x512xf32>
    %107 = arith.mulf %104, %106 : vector<8x512xf32>
    %c15_i32_72 = arith.constant 15 : i32
    %108 = tpu.dynamic_rotate %97 by %c15_i32_72 dim 1 : vector<8x512xf32>, i32 -> vector<8x512xf32>
    %c2_73 = arith.constant 2 : index
    %c0_74 = arith.constant 0 : index
    %c0_75 = arith.constant 0 : index
    %109 = vector.load %arg1[%c2_73, %c0_74, %c0_75] : memref<9x8x512xf32, #tpu.memory_space<vmem>>, vector<1x8x512xf32>
    %110 = vector.shape_cast %109 : vector<1x8x512xf32> to vector<8x512xf32>
    %111 = arith.mulf %108, %110 : vector<8x512xf32>
    %c1_i32_76 = arith.constant 1 : i32
    %112 = tpu.dynamic_rotate %97 by %c1_i32_76 dim 1 : vector<8x512xf32>, i32 -> vector<8x512xf32>
    %c3_77 = arith.constant 3 : index
    %c0_78 = arith.constant 0 : index
    %c0_79 = arith.constant 0 : index
    %113 = vector.load %arg1[%c3_77, %c0_78, %c0_79] : memref<9x8x512xf32, #tpu.memory_space<vmem>>, vector<1x8x512xf32>
    %114 = vector.shape_cast %113 : vector<1x8x512xf32> to vector<8x512xf32>
    %115 = arith.mulf %112, %114 : vector<8x512xf32>
    %c4_80 = arith.constant 4 : index
    %c0_81 = arith.constant 0 : index
    %c0_82 = arith.constant 0 : index
    %116 = vector.load %arg1[%c4_80, %c0_81, %c0_82] : memref<9x8x512xf32, #tpu.memory_space<vmem>>, vector<1x8x512xf32>
    %117 = vector.shape_cast %116 : vector<1x8x512xf32> to vector<8x512xf32>
    %118 = arith.mulf %97, %117 : vector<8x512xf32>
    %c511_i32_83 = arith.constant 511 : i32
    %119 = tpu.dynamic_rotate %97 by %c511_i32_83 dim 1 : vector<8x512xf32>, i32 -> vector<8x512xf32>
    %c5_84 = arith.constant 5 : index
    %c0_85 = arith.constant 0 : index
    %c0_86 = arith.constant 0 : index
    %120 = vector.load %arg1[%c5_84, %c0_85, %c0_86] : memref<9x8x512xf32, #tpu.memory_space<vmem>>, vector<1x8x512xf32>
    %121 = vector.shape_cast %120 : vector<1x8x512xf32> to vector<8x512xf32>
    %122 = arith.mulf %119, %121 : vector<8x512xf32>
    %c497_i32_87 = arith.constant 497 : i32
    %123 = tpu.dynamic_rotate %97 by %c497_i32_87 dim 1 : vector<8x512xf32>, i32 -> vector<8x512xf32>
    %c6_88 = arith.constant 6 : index
    %c0_89 = arith.constant 0 : index
    %c0_90 = arith.constant 0 : index
    %124 = vector.load %arg1[%c6_88, %c0_89, %c0_90] : memref<9x8x512xf32, #tpu.memory_space<vmem>>, vector<1x8x512xf32>
    %125 = vector.shape_cast %124 : vector<1x8x512xf32> to vector<8x512xf32>
    %126 = arith.mulf %123, %125 : vector<8x512xf32>
    %c496_i32_91 = arith.constant 496 : i32
    %127 = tpu.dynamic_rotate %97 by %c496_i32_91 dim 1 : vector<8x512xf32>, i32 -> vector<8x512xf32>
    %c7_92 = arith.constant 7 : index
    %c0_93 = arith.constant 0 : index
    %c0_94 = arith.constant 0 : index
    %128 = vector.load %arg1[%c7_92, %c0_93, %c0_94] : memref<9x8x512xf32, #tpu.memory_space<vmem>>, vector<1x8x512xf32>
    %129 = vector.shape_cast %128 : vector<1x8x512xf32> to vector<8x512xf32>
    %130 = arith.mulf %127, %129 : vector<8x512xf32>
    %c495_i32_95 = arith.constant 495 : i32
    %131 = tpu.dynamic_rotate %97 by %c495_i32_95 dim 1 : vector<8x512xf32>, i32 -> vector<8x512xf32>
    %c8_96 = arith.constant 8 : index
    %c0_97 = arith.constant 0 : index
    %c0_98 = arith.constant 0 : index
    %132 = vector.load %arg1[%c8_96, %c0_97, %c0_98] : memref<9x8x512xf32, #tpu.memory_space<vmem>>, vector<1x8x512xf32>
    %133 = vector.shape_cast %132 : vector<1x8x512xf32> to vector<8x512xf32>
    %134 = arith.mulf %131, %133 : vector<8x512xf32>
    %135 = tpu.concatenate %103, %107, %111, %115, %118, %122, %126, %130, %134 in 0 : vector<8x512xf32>, vector<8x512xf32>, vector<8x512xf32>, vector<8x512xf32>, vector<8x512xf32>, vector<8x512xf32>, vector<8x512xf32>, vector<8x512xf32>, vector<8x512xf32> -> vector<72x512xf32>
    %cst_99 = arith.constant dense<0.000000e+00> : vector<8x512xf32>
    %136 = tpu.matmul %98, %135, %cst_99 {dimension_numbers = #tpu.dot_dimension_numbers<[1], [0], [0], [1], [0, 0, 1, 1], [], []>} : vector<8x72xf32>, vector<72x512xf32>, vector<8x512xf32> -> vector<8x512xf32>
    %137 = vector.broadcast %99 : vector<8x1xf32> to vector<8x512xf32>
    %138 = arith.addf %136, %137 : vector<8x512xf32>
    %139 = arith.addf %4, %138 : vector<8x512xf32>
    %140 = vector.extract_strided_slice %139 {offsets = [0, 0], sizes = [8, 256], strides = [1, 1]} : vector<8x512xf32> to vector<8x256xf32>
    %c0_100 = arith.constant 0 : index
    %c0_101 = arith.constant 0 : index
    %c0_102 = arith.constant 0 : index
    %141 = vector.load %arg14[%c0_100, %c0_101, %c0_102] : memref<2x8x256xf32, #tpu.memory_space<vmem>>, vector<1x8x256xf32>
    %142 = vector.shape_cast %141 : vector<1x8x256xf32> to vector<8x256xf32>
    %143 = vector.shape_cast %140 : vector<8x256xf32> to vector<1x8x256xf32>
    tpu.vector_store %arg14[%c0_100, %c0_101, %c0_102], %143 {strides = array<i32>} : memref<2x8x256xf32, #tpu.memory_space<vmem>>, vector<1x8x256xf32>,
    %144 = vector.extract_strided_slice %139 {offsets = [0, 256], sizes = [8, 256], strides = [1, 1]} : vector<8x512xf32> to vector<8x256xf32>
    %c1_103 = arith.constant 1 : index
    %c0_104 = arith.constant 0 : index
    %c0_105 = arith.constant 0 : index
    %145 = vector.load %arg14[%c1_103, %c0_104, %c0_105] : memref<2x8x256xf32, #tpu.memory_space<vmem>>, vector<1x8x256xf32>
    %146 = vector.shape_cast %145 : vector<1x8x256xf32> to vector<8x256xf32>
    %147 = vector.shape_cast %144 : vector<8x256xf32> to vector<1x8x256xf32>
    tpu.vector_store %arg14[%c1_103, %c0_104, %c0_105], %147 {strides = array<i32>} : memref<2x8x256xf32, #tpu.memory_space<vmem>>, vector<1x8x256xf32>,
    return
  }
}

</mosaic_0001>

<bundles_post_ra>
// kernel: tpu_custom_call.1
= control target key start
LH: loop header
LB: loop body
LE: loop exit
PB: predicated region body
PF: predicated region fallthrough
CT: control target
= control target key end

     0   :  { %s4536_s0 = inlined_call_operand.vmem [shape: f32[2,8,256], index: 0, kind: input, shape index: {}]   ;;  %s4537_s1 = inlined_call_operand.vmem [shape: f32[9,8,512], index: 1, kind: input, shape index: {}]   ;;  %s4538_s2 = inlined_call_operand.vmem [shape: f32[512,8], index: 2, kind: input, shape index: {}]   ;;  %s4539_s3 = inlined_call_operand.vmem [shape: f32[8,512], index: 3, kind: input, shape index: {}]   ;;  %s4540_s4 = inlined_call_operand.vmem [shape: f32[8,72], index: 4, kind: input, shape index: {}]   ;;  %s4541_s5 = inlined_call_operand.vmem [shape: f32[8,1], index: 5, kind: input, shape index: {}]   ;;  %s4542_s6 = inlined_call_operand.vmem [shape: f32[8,8], index: 6, kind: input, shape index: {}]   ;;  %s4543_s7 = inlined_call_operand.vmem [shape: f32[8,1], index: 7, kind: input, shape index: {}]   ;;  %s4544_s8 = inlined_call_operand.vmem [shape: f32[8,1], index: 8, kind: input, shape index: {}]   ;;  %s4545_s9 = inlined_call_operand.vmem [shape: f32[8,72], index: 9, kind: input, shape index: {}]   ;;  %s4546_s10 = inlined_call_operand.vmem [shape: f32[8,1], index: 10, kind: input, shape index: {}]   ;;  %s4547_s11 = inlined_call_operand.vmem [shape: f32[8,8], index: 11, kind: input, shape index: {}]   ;;  %s4548_s12 = inlined_call_operand.vmem [shape: f32[8,1], index: 12, kind: input, shape index: {}]   ;;  %s4549_s13 = inlined_call_operand.vmem [shape: f32[8,1], index: 13, kind: input, shape index: {}]   ;;  %s4550_s14 = inlined_call_operand.hbm [shape: f32[2,8,256], index: 14, kind: output, shape index: {}]  }
   0x1   :  { %v2940_v0 = vld [vmem:[%s4538_s2 + $0xf8] sm:$0xff]  ;;  %v2962_v4 = vld [vmem:[%s4538_s2 + $0xf0] sm:$0xff]  ;;  %v2984_v8 = vld [vmem:[%s4538_s2 + $0xe8] sm:$0xff] }
   0x2   :  { %v2945_v1 = vld [vmem:[%s4538_s2 + $0x1f8] sm:$0xff]  ;;  %2384 = vmatprep.subr.mxu0 %v2940_v0  ;;  %v2967_v5 = vld [vmem:[%s4538_s2 + $0x1f0] sm:$0xff]  ;;  %v2991_v9 = vld [vmem:[%s4538_s2 + $0x1e8] sm:$0xff] }
   0x3   :  { %v2950_v2 = vld [vmem:[%s4538_s2 + $0x78] sm:$0xff]  ;;  %2419 = vmatprep.subr.mxu1 %v2945_v1  ;;  %v2974_v6 = vld [vmem:[%s4538_s2 + $0x70] sm:$0xff]  ;;  %v2996_v10 = vld [vmem:[%s4538_s2 + $0x68] sm:$0xff] }
   0x4   :  { %v2957_v3 = vld [vmem:[%s4538_s2 + $0x178] sm:$0xff]  ;;  %2385 = vmatpush3.msra.mxu0 %v2950_v2  ;;  %v2979_v7 = vld [vmem:[%s4538_s2 + $0x170] sm:$0xff]  ;;  %v3001_v11 = vld [vmem:[%s4538_s2 + $0x168] sm:$0xff] }
   0x5   :  { %2420 = vmatpush3.msra.mxu1 %v2957_v3  ;;  %2386 = vmatprep.subr.mxu0 %v2962_v4  ;;  %v3008_v12 = vld [vmem:[%s4538_s2 + $0xe0] sm:$0xff]  ;;  %v3032_v16 = vld [vmem:[%s4538_s2 + $0xd8] sm:$0xff]  ;;  %v3056_v20 = vld [vmem:[%s4538_s2 + $0xd0] sm:$0xff] }
   0x6   :  { %2421 = vmatprep.subr.mxu1 %v2967_v5  ;;  %2387 = vmatpush3.msra.mxu0 %v2974_v6  ;;  %v3013_v13 = vld [vmem:[%s4538_s2 + $0x1e0] sm:$0xff]  ;;  %v3037_v17 = vld [vmem:[%s4538_s2 + $0x1d8] sm:$0xff]  ;;  %v3061_v21 = vld [vmem:[%s4538_s2 + $0x1d0] sm:$0xff] }
   0x7   :  { %2422 = vmatpush3.msra.mxu1 %v2979_v7  ;;  %2388 = vmatprep.subr.mxu0 %v2984_v8  ;;  %v3020_v14 = vld [vmem:[%s4538_s2 + $0x60] sm:$0xff]  ;;  %v3044_v18 = vld [vmem:[%s4538_s2 + $0x58] sm:$0xff]  ;;  %v3068_v22 = vld [vmem:[%s4538_s2 + $0x50] sm:$0xff] }
   0x8   :  { %2423 = vmatprep.subr.mxu1 %v2991_v9  ;;  %v3025_v15 = vld [vmem:[%s4538_s2 + $0x160] sm:$0xff]  ;;  %2389 = vmatpush3.msra.mxu0 %v2996_v10  ;;  %v3049_v19 = vld [vmem:[%s4538_s2 + $0x158] sm:$0xff]  ;;  %v3073_v23 = vld [vmem:[%s4538_s2 + $0x150] sm:$0xff] }
   0x9   :  { %2424 = vmatpush3.msra.mxu1 %v3001_v11  ;;  %2390 = vmatprep.subr.mxu0 %v3008_v12  ;;  %v3080_v24 = vld [vmem:[%s4538_s2 + $0xc8] sm:$0xff]  ;;  %v3104_v28 = vld [vmem:[%s4538_s2 + $0xc0] sm:$0xff]  ;;  %v3128_v32 = vld [vmem:[%s4538_s2 + $0xb8] sm:$0xff] }
   0xa   :  { %2425 = vmatprep.subr.mxu1 %v3013_v13  ;;  %2391 = vmatpush3.msra.mxu0 %v3020_v14  ;;  %v3085_v25 = vld [vmem:[%s4538_s2 + $0x1c8] sm:$0xff]  ;;  %v3109_v29 = vld [vmem:[%s4538_s2 + $0x1c0] sm:$0xff]  ;;  %v3133_v33 = vld [vmem:[%s4538_s2 + $0x1b8] sm:$0xff] }
   0xb   :  { %2426 = vmatpush3.msra.mxu1 %v3025_v15  ;;  %2392 = vmatprep.subr.mxu0 %v3032_v16  ;;  %v3092_v26 = vld [vmem:[%s4538_s2 + $0x48] sm:$0xff]  ;;  %v3116_v30 = vld [vmem:[%s4538_s2 + $0x40] sm:$0xff]  ;;  %v3140_v34 = vld [vmem:[%s4538_s2 + $0x38] sm:$0xff] }
   0xc   :  { %2427 = vmatprep.subr.mxu1 %v3037_v17  ;;  %2393 = vmatpush3.msra.mxu0 %v3044_v18  ;;  %v3097_v27 = vld [vmem:[%s4538_s2 + $0x148] sm:$0xff]  ;;  %v3121_v31 = vld [vmem:[%s4538_s2 + $0x140] sm:$0xff]  ;;  %v3145_v35 = vld [vmem:[%s4538_s2 + $0x138] sm:$0xff] }
   0xd   :  { %2428 = vmatpush3.msra.mxu1 %v3049_v19  ;;  %2394 = vmatprep.subr.mxu0 %v3056_v20  ;;  %v3152_v36 = vld [vmem:[%s4538_s2 + $0xb0] sm:$0xff]  ;;  %v3176_v40 = vld [vmem:[%s4538_s2 + $0xa8] sm:$0xff]  ;;  %v3200_v44 = vld [vmem:[%s4538_s2 + $0xa0] sm:$0xff] }
   0xe   :  { %2429 = vmatprep.subr.mxu1 %v3061_v21  ;;  %2395 = vmatpush3.msra.mxu0 %v3068_v22  ;;  %v3157_v37 = vld [vmem:[%s4538_s2 + $0x1b0] sm:$0xff]  ;;  %v3181_v41 = vld [vmem:[%s4538_s2 + $0x1a8] sm:$0xff]  ;;  %v3205_v45 = vld [vmem:[%s4538_s2 + $0x1a0] sm:$0xff] }
   0xf   :  { %2430 = vmatpush3.msra.mxu1 %v3073_v23  ;;  %2396 = vmatprep.subr.mxu0 %v3080_v24  ;;  %v3164_v38 = vld [vmem:[%s4538_s2 + $0x30] sm:$0xff]  ;;  %v3188_v42 = vld [vmem:[%s4538_s2 + $0x28] sm:$0xff]  ;;  %v3212_v46 = vld [vmem:[%s4538_s2 + $0x20] sm:$0xff] }
  0x10   :  { %2431 = vmatprep.subr.mxu1 %v3085_v25  ;;  %2397 = vmatpush3.msra.mxu0 %v3092_v26  ;;  %v3169_v39 = vld [vmem:[%s4538_s2 + $0x130] sm:$0xff]  ;;  %v3193_v43 = vld [vmem:[%s4538_s2 + $0x128] sm:$0xff]  ;;  %v3217_v47 = vld [vmem:[%s4538_s2 + $0x120] sm:$0xff] }
  0x11   :  { %2432 = vmatpush3.msra.mxu1 %v3097_v27  ;;  %2398 = vmatprep.subr.mxu0 %v3104_v28  ;;  %v3224_v48 = vld [vmem:[%s4538_s2 + $0x98] sm:$0xff] }
  0x12   :  { %2433 = vmatprep.subr.mxu1 %v3109_v29  ;;  %2399 = vmatpush3.msra.mxu0 %v3116_v30  ;;  %v3229_v49 = vld [vmem:[%s4538_s2 + $0x198] sm:$0xff] }
  0x13   :  { %2434 = vmatpush3.msra.mxu1 %v3121_v31  ;;  %2400 = vmatprep.subr.mxu0 %v3128_v32 }
  0x14   :  { %2435 = vmatprep.subr.mxu1 %v3133_v33  ;;  %2401 = vmatpush3.msra.mxu0 %v3140_v34 }
  0x15   :  { %2436 = vmatpush3.msra.mxu1 %v3145_v35  ;;  %2402 = vmatprep.subr.mxu0 %v3152_v36 }
  0x16   :  { %2437 = vmatprep.subr.mxu1 %v3157_v37  ;;  %2403 = vmatpush3.msra.mxu0 %v3164_v38 }
  0x17   :  { %2438 = vmatpush3.msra.mxu1 %v3169_v39  ;;  %2404 = vmatprep.subr.mxu0 %v3176_v40 }
  0x18   :  { %2439 = vmatprep.subr.mxu1 %v3181_v41  ;;  %2405 = vmatpush3.msra.mxu0 %v3188_v42 }
  0x19   :  { %2440 = vmatpush3.msra.mxu1 %v3193_v43 }
  0x1a   :  { %19 = vsyncpa [#allocation3], 0  ;;  %2406 = vmatprep.subr.mxu0 %v3200_v44  ;;  %2441 = vmatprep.subr.mxu1 %v3205_v45  ;;  %v3236_v50 = vld [vmem:[%s4538_s2 + $0x18] sm:$0xff]  ;;  %v3248_v52 = vld [vmem:[%s4538_s2 + $0x90] sm:$0xff]  ;;  %vm2850_vm0 = vmmov 0   ;;  %vm264_vm1 = vcmask 64512  }
  0x1b   :  { %v3241_v51 = vld [vmem:[%s4538_s2 + $0x118] sm:$0xff]  ;;  %2407 = vmatpush3.msra.mxu0 %v3212_v46  ;;  %2442 = vmatpush3.msra.mxu1 %v3217_v47  ;;  %v3253_v53 = vld [vmem:[%s4538_s2 + $0x190] sm:$0xff]  ;;  %v3272_v56 = vld [vmem:[%s4538_s2 + $0x88] sm:$0xff]  ;;  %s2854_s18 = smov 113   ;;  %s2855_s19 = smov 127   ;;  %vm1093_vm10 = vcmask 588800  }
  0x1c   :  { %2408 = vmatprep.subr.mxu0 %v3224_v48  ;;  %2443 = vmatprep.subr.mxu1 %v3229_v49  ;;  %v3260_v54 = vld [vmem:[%s4538_s2 + $0x10] sm:$0xff]  ;;  %4623 = vst [vmem:[#allocation7_spill] sm:$0xff] %v3272_v56  ;;  %v3277_v57 = vld [vmem:[%s4538_s2 + $0x188] sm:$0xff]  ;;  %v3296_v60 = vld [vmem:[%s4538_s2 + $0x80] sm:$0xff]  ;;  %s2856_s20 = smov 1   ;;  %s2857_s21 = smov 15  }
  0x1d   :  { %4621 = vst [vmem:[#allocation5_spill] sm:$0xff] %v3260_v54  ;;  %v3265_v55 = vld [vmem:[%s4538_s2 + $0x110] sm:$0xff]  ;;  %2409 = vmatpush3.msra.mxu0 %v3236_v50  ;;  %2444 = vmatpush3.msra.mxu1 %v3241_v51  ;;  %4624 = vst [vmem:[#allocation8_spill] sm:$0xff] %v3277_v57  ;;  %v3284_v58 = vld [vmem:[%s4538_s2 + $0x8] sm:$0xff]  ;;  %s2858_s22 = smov 16   ;;  %s2859_s23 = smov 17  }
  0x1e   :  { %4622 = vst [vmem:[#allocation6_spill] sm:$0xff] %v3265_v55  ;;  %2410 = vmatprep.subr.mxu0 %v3248_v52  ;;  %2445 = vmatprep.subr.mxu1 %v3253_v53  ;;  %4625 = vst [vmem:[#allocation9_spill] sm:$0xff] %v3284_v58  ;;  %v3289_v59 = vld [vmem:[%s4538_s2 + $0x108] sm:$0xff]  ;;  %v3301_v61 = vld [vmem:[%s4538_s2 + $0x180] sm:$0xff] }
  0x1f   :  { %4626 = vst [vmem:[#allocation10_spill] sm:$0xff] %v3289_v59  ;;  %2411 = vmatpush3.msra.mxu0 %v3260_v54  ;;  %2446 = vmatpush3.msra.mxu1 %v3265_v55  ;;  %4627 = vst [vmem:[#allocation11_spill] sm:$0xff] %v3296_v60  ;;  %v3308_v62 = vld [vmem:[%s4538_s2] sm:$0xff]  ;;  %v3313_v63 = vld [vmem:[%s4536_s0 + $0x8] sm:$0xff] }
  0x20   :  { %4628 = vst [vmem:[#allocation12_spill] sm:$0xff] %v3301_v61  ;;  %2412 = vmatprep.subr.mxu0 %v3272_v56  ;;  %2447 = vmatprep.subr.mxu1 %v3277_v57  ;;  %4629 = vst [vmem:[#allocation13_spill] sm:$0xff] %v3308_v62  ;;  %v3320_v56 = vld [vmem:[%s4538_s2 + $0x100] sm:$0xff]  ;;  %v3325_v57 = vld [vmem:[%s4536_s0 + $0x18] sm:$0xff] }
  0x21   :  { %4630 = vst [vmem:[#allocation14_spill] sm:$0xff] %v3313_v63  ;;  %2413 = vmatpush3.msra.mxu0 %v3284_v58  ;;  %2448 = vmatpush3.msra.mxu1 %v3289_v59  ;;  %4631 = vst [vmem:[#allocation15_spill] sm:$0xff] %v3320_v56  ;;  %v3332_v58 = vld [vmem:[%s4536_s0] sm:$0xff]  ;;  %v3337_v59 = vld [vmem:[%s4536_s0 + $0x10] sm:$0xff] }
  0x22   :  { %4632 = vst [vmem:[#allocation16_spill] sm:$0xff] %v3325_v57  ;;  %2414 = vmatprep.subr.mxu0 %v3296_v60  ;;  %2449 = vmatprep.subr.mxu1 %v3301_v61  ;;  %4633 = vst [vmem:[#allocation17_spill] sm:$0xff] %v3332_v58  ;;  %v4572_v61 = vmov 0.0   ;;  %v3358_v54 = vld [vmem:[%s4542_s6] sm:$0xff] }
  0x23   :  { %4634 = vst [vmem:[#allocation18_spill] sm:$0xff] %v3337_v59  ;;  %2415 = vmatpush3.msra.mxu0 %v3308_v62  ;;  %188 = vmatprep.mubr.f32.mxu0 %v3313_v63  ;;  %v3352_v63 = vld [vmem:[%s4539_s3 + $0x8] sm:$0xff] }
  0x24   :  { %2450 = vmatpush3.msra.mxu1 %v3320_v56  ;;  %258 = vmatprep.mubr.f32.mxu1 %v3325_v57 }
  0x25   :  { %189 = vmatmul.mubr.f32.vlgmr.msra.gmra.mxu0 %v3332_v58  ;;  %259 = vmatmul.mubr.f32.vlgmr.msra.gmra.mxu1 %v3337_v59 }
  0x26   :  { %2672 = vmatprep.subr.mxu0 %v4572_v61  ;;  %405 = vmatprep.mubr.f32.mxu1 %v4572_v61 }
  0x27   :  { %2674 = vmatprep.mubr.msk.f32.mxu0 %vm2850_vm0, %v4572_v61  ;;  %371 = vmatprep.subr.mxu1 %v3352_v63  ;;  %v3363_v61 = vld [vmem:[%s4539_s3 + $0x18] sm:$0xff] }
  0xe5   :  { %v2416_v57 = vpop.f32.mrf.mxu0  ;;  %v2451_v58 = vpop.f32.mrf.mxu1 }
  0xe7   :  { %v2417_v56 = vpop.f32.mrf.mxu0  ;;  %v2452_v59 = vpop.f32.mrf.mxu1 }
  0xe8   :  { %v2418_v62 = vadd.f32 %v2417_v56, %v2416_v57  ;;  %v2453_v60 = vadd.f32 %v2452_v59, %v2451_v58  ;;  %v4635_v56 = vmov 0.0   ;;  %v3372_v57 = vld [vmem:[%s4539_s3] sm:$0xff]  ;;  %v3377_v58 = vld [vmem:[%s4539_s3 + $0x10] sm:$0xff] }
  0xe9   :  { %372 = vmatpush1.msra.mxu1 %v3372_v57 }
  0xea   :  { %v261_v55 = vadd.f32 %v2453_v60, %v2418_v62  ;;  %2456 = vmatprep.subr.mxu1 %v2940_v0  ;;  %v4636_v0 = vld [vmem:[#allocation5_spill] sm:$0xff] }
  0xec   :  { %2673 = vmatpush3.msra.mxu0 %v261_v55 }
  0xed   :  { %2675 = vmatmul.mubr.msk.f32.vlgmr.msra.gmra.mxu0 %vm264_vm1, %v3358_v54  ;;  %442 = vmatprep.subr.mxu0 %v3363_v61 }
  0xee   :  { %476 = vmatprep.mubr.f32.mxu0 %v4635_v56  ;;  %443 = vmatpush1.msra.mxu0 %v3377_v58 }
  0xef   :  { %2491 = vmatprep.subr.mxu0 %v2945_v1  ;;  %v4637_v1 = vld [vmem:[#allocation6_spill] sm:$0xff] }
 0x1ad   :  { %v334_v55 = vpop.f32.mrf.mxu0 }
 0x1ae   :  { %2329 = vmatmul.mubr.msk.f32.vlgmr.msra.gmra.mxu1 %vm264_vm1, %v334_v55  ;;  %2330 = vmatmul.mubr.msk.f32.vlgmr.msra.gmra.mxu0 %vm264_vm1, %v334_v55 }
 0x1af   :  { %v2676_v59 = vpop.f32.mrf.mxu0  ;;  %2457 = vmatpush3.msra.mxu1 %v2950_v2  ;;  %2492 = vmatpush3.msra.mxu0 %v2957_v3  ;;  %v4638_v2 = vld [vmem:[#allocation7_spill] sm:$0xff]  ;;  %v4639_v3 = vld [vmem:[#allocation8_spill] sm:$0xff] }
 0x1b0   :  { %2458 = vmatprep.subr.mxu1 %v2962_v4  ;;  %2493 = vmatprep.subr.mxu0 %v2967_v5  ;;  %v4640_v4 = vld [vmem:[#allocation9_spill] sm:$0xff]  ;;  %v4641_v5 = vld [vmem:[#allocation10_spill] sm:$0xff] }
 0x1b1   :  { %2459 = vmatpush3.msra.mxu1 %v2974_v6  ;;  %2494 = vmatpush3.msra.mxu0 %v2979_v7  ;;  %v4642_v6 = vld [vmem:[#allocation11_spill] sm:$0xff]  ;;  %v4643_v7 = vld [vmem:[#allocation12_spill] sm:$0xff] }
 0x1b2   :  { %2460 = vmatprep.subr.mxu1 %v2984_v8  ;;  %2495 = vmatprep.subr.mxu0 %v2991_v9  ;;  %v4644_v8 = vld [vmem:[#allocation13_spill] sm:$0xff]  ;;  %v4645_v9 = vld [vmem:[#allocation15_spill] sm:$0xff] }
 0x1b3   :  { %2461 = vmatpush3.msra.mxu1 %v2996_v10  ;;  %2496 = vmatpush3.msra.mxu0 %v3001_v11 }
 0x1b4   :  { %2462 = vmatprep.subr.mxu1 %v3008_v12  ;;  %2497 = vmatprep.subr.mxu0 %v3013_v13  ;;  %v4646_v12 = vld [vmem:[#allocation17_spill] sm:$0xff] }
 0x1b5   :  { %2463 = vmatpush3.msra.mxu1 %v3020_v14  ;;  %2498 = vmatpush3.msra.mxu0 %v3025_v15  ;;  %v4647_v14 = vld [vmem:[#allocation18_spill] sm:$0xff] }
 0x1b6   :  { %2464 = vmatprep.subr.mxu1 %v3032_v16  ;;  %2499 = vmatprep.subr.mxu0 %v3037_v17 }
 0x1b7   :  { %2465 = vmatpush3.msra.mxu1 %v3044_v18  ;;  %2500 = vmatpush3.msra.mxu0 %v3049_v19  ;;  %v4648_v18 = vld [vmem:[#allocation14_spill] sm:$0xff] }
 0x1b8   :  { %2466 = vmatprep.subr.mxu1 %v3056_v20  ;;  %2501 = vmatprep.subr.mxu0 %v3061_v21  ;;  %v4649_v20 = vld [vmem:[#allocation16_spill] sm:$0xff] }
 0x1b9   :  { %2467 = vmatpush3.msra.mxu1 %v3068_v22  ;;  %2502 = vmatpush3.msra.mxu0 %v3073_v23 }
 0x1ba   :  { %2468 = vmatprep.subr.mxu1 %v3080_v24  ;;  %2503 = vmatprep.subr.mxu0 %v3085_v25 }
 0x1bb   :  { %2469 = vmatpush3.msra.mxu1 %v3092_v26  ;;  %2504 = vmatpush3.msra.mxu0 %v3097_v27 }
 0x1bc   :  { %2470 = vmatprep.subr.mxu1 %v3104_v28  ;;  %2505 = vmatprep.subr.mxu0 %v3109_v29 }
 0x1bd   :  { %2471 = vmatpush3.msra.mxu1 %v3116_v30  ;;  %2506 = vmatpush3.msra.mxu0 %v3121_v31 }
 0x1be   :  { %2472 = vmatprep.subr.mxu1 %v3128_v32  ;;  %2507 = vmatprep.subr.mxu0 %v3133_v33  ;;  %v122_v33 = vld [vmem:[%s4543_s7] sm:$0xff]  ;;  %s2852_s7 = smov 111  }
 0x1bf   :  { %2473 = vmatpush3.msra.mxu1 %v3140_v34  ;;  %2508 = vmatpush3.msra.mxu0 %v3145_v35  ;;  %v2851_v34 = vmov 0   ;;  %v123_v35 = vld [vmem:[%s4544_s8] sm:$0xff]  ;;  %s2853_s8 = smov 112  }
 0x1c0   :  { %2474 = vmatprep.subr.mxu1 %v3152_v36  ;;  %2509 = vmatprep.subr.mxu0 %v3157_v37 }
 0x1c1   :  { %2475 = vmatpush3.msra.mxu1 %v3164_v38  ;;  %2510 = vmatpush3.msra.mxu0 %v3169_v39 }
 0x1c2   :  { %2476 = vmatprep.subr.mxu1 %v3176_v40  ;;  %2511 = vmatprep.subr.mxu0 %v3181_v41 }
 0x1c3   :  { %2477 = vmatpush3.msra.mxu1 %v3188_v42  ;;  %2512 = vmatpush3.msra.mxu0 %v3193_v43 }
 0x1c4   :  { %2478 = vmatprep.subr.mxu1 %v3200_v44  ;;  %2513 = vmatprep.subr.mxu0 %v3205_v45 }
 0x1c5   :  { %2479 = vmatpush3.msra.mxu1 %v3212_v46  ;;  %2514 = vmatpush3.msra.mxu0 %v3217_v47 }
 0x1c6   :  { %2480 = vmatprep.subr.mxu1 %v3224_v48  ;;  %2515 = vmatprep.subr.mxu0 %v3229_v49 }
 0x1c7   :  { %2481 = vmatpush3.msra.mxu1 %v3236_v50  ;;  %2516 = vmatpush3.msra.mxu0 %v3241_v51 }
 0x1c8   :  { %2482 = vmatprep.subr.mxu1 %v3248_v52  ;;  %2517 = vmatprep.subr.mxu0 %v3253_v53 }
 0x1c9   :  { %2483 = vmatpush3.msra.mxu1 %v4636_v0  ;;  %2518 = vmatpush3.msra.mxu0 %v4637_v1 }
 0x1ca   :  { %2484 = vmatprep.subr.mxu1 %v4638_v2  ;;  %2519 = vmatprep.subr.mxu0 %v4639_v3 }
 0x1cb   :  { %2485 = vmatpush3.msra.mxu1 %v4640_v4  ;;  %2520 = vmatpush3.msra.mxu0 %v4641_v5 }
 0x1cc   :  { %2486 = vmatprep.subr.mxu1 %v4642_v6  ;;  %2521 = vmatprep.subr.mxu0 %v4643_v7 }
 0x1cd   :  { %2487 = vmatpush3.msra.mxu1 %v4644_v8  ;;  %2522 = vmatpush3.msra.mxu0 %v4645_v9 }
 0x1ce   :  { %2677 = vmatprep.subr.mxu1 %v4635_v56  ;;  %734 = vmatprep.subr.mxu0 %v3352_v63 }
 0x1cf   :  { %2705 = vset.pattern.permute.xlu0 %v2851_v34  ;;  %2706 = vset.pattern.permute.xlu1 %v2851_v34  ;;  %v910_v34 = vlaneseq }
 0x1d0   :  { %856 = vperm.xlu0 %2705, %v122_v33   ;;  %v1241_v33 = vld [vmem:[%s4549_s13] sm:$0xff] }
 0x1d4   :  { %865 = vperm.xlu0 %2705, %v123_v35   ;;  %v3550_v35 = vand.u32 127, %v910_v34 }
 0x1d6   :  { %4650 = vst [vmem:[#allocation5_spill] sm:$0xff] %v3550_v35  ;;  %vm1074_vm2 = vcmp.lt.s32.totalorder %v3550_v35, 111  ;;  %vm1052_vm3 = vcmp.lt.s32.totalorder %v3550_v35, 112  ;;  %vm1030_vm4 = vcmp.lt.s32.totalorder %v3550_v35, 113  ;;  %vm1008_vm5 = vcmp.lt.s32.totalorder %v3550_v35, 127 }
 0x1d7   :  { %vm977_vm6 = vcmp.lt.s32.totalorder %v3550_v35, 1  ;;  %vm955_vm7 = vcmp.lt.s32.totalorder %v3550_v35, 15  ;;  %vm933_vm8 = vcmp.lt.s32.totalorder %v3550_v35, 16  ;;  %vm912_vm9 = vcmp.lt.s32.totalorder %v3550_v35, 17  ;;  %v4158_v35 = vld [vmem:[%s4538_s2 + $0x90] sm:$0xff] }
 0x1d8   :  { %4690 = vst [vmem:[#allocation45_spill] sm:$0xff] %v4158_v35 }
 0x24b   :  { %v857_v46 = vpop.permute.xlu0 %856 }
 0x24f   :  { %v866_v55 = vpop.permute.xlu0 %865 }
 0x26e   :  { %v407_v10 = vpop.f32.mrf.mxu1  ;;  %v478_v11 = vpop.f32.mrf.mxu0 }
 0x26f   :  { %v483_v13 = vsub.f32 %v4646_v12, %v407_v10  ;;  %v485_v15 = vsub.f32 %v4647_v14, %v478_v11 }
 0x270   :  { %v409_v16 = vpop.f32.mrf.mxu1  ;;  %v480_v17 = vpop.f32.mrf.mxu0 }
 0x271   :  { %v484_v19 = vsub.f32 %v4648_v18, %v409_v16  ;;  %v486_v21 = vsub.f32 %v4649_v20, %v480_v17  ;;  %v487_v24 = vmul.f32 %v483_v13, %v483_v13  ;;  %v489_v25 = vmul.f32 %v485_v15, %v485_v15 }
 0x273   :  { %v488_v22 = vmul.f32 %v484_v19, %v484_v19  ;;  %v490_v23 = vmul.f32 %v486_v21, %v486_v21 }
 0x275   :  { %555 = vmatprep.mubr.f32.mxu1 %v488_v22  ;;  %625 = vmatprep.mubr.f32.mxu0 %v490_v23 }
 0x276   :  { %556 = vmatmul.mubr.f32.vlgmr.msra.gmra.mxu1 %v487_v24  ;;  %626 = vmatmul.mubr.f32.vlgmr.msra.gmra.mxu0 %v489_v25 }
 0x277   :  { %2679 = vmatprep.mubr.msk.f32.mxu1 %vm2850_vm0, %v4635_v56  ;;  %735 = vmatpush1.msra.mxu0 %v3372_v57 }
 0x278   :  { %768 = vmatprep.mubr.f32.mxu0 %v4635_v56 }
 0x336   :  { %v2488_v26 = vpop.f32.mrf.mxu1  ;;  %v2523_v27 = vpop.f32.mrf.mxu0 }
 0x338   :  { %v2489_v28 = vpop.f32.mrf.mxu1  ;;  %v2524_v29 = vpop.f32.mrf.mxu0 }
 0x339   :  { %v2490_v30 = vadd.f32 %v2489_v28, %v2488_v26  ;;  %v2525_v31 = vadd.f32 %v2524_v29, %v2523_v27 }
 0x33b   :  { %v628_v32 = vadd.f32 %v2525_v31, %v2490_v30 }
 0x33d   :  { %2678 = vmatpush3.msra.mxu1 %v628_v32  ;;  %v901_v32 = vld [vmem:[%s4541_s5] sm:$0xff] }
 0x33e   :  { %2680 = vmatmul.mubr.msk.f32.vlgmr.msra.gmra.mxu1 %vm264_vm1, %v3358_v54  ;;  %805 = vmatprep.subr.mxu1 %v3363_v61 }
 0x33f   :  { %806 = vmatpush1.msra.mxu1 %v3377_v58  ;;  %839 = vmatprep.mubr.f32.mxu1 %v4635_v56 }
 0x3fe   :  { %v697_v36 = vpop.f32.mrf.mxu1 }
 0x3ff   :  { %2332 = vmatmul.mubr.msk.f32.vlgmr.msra.gmra.mxu0 %vm264_vm1, %v697_v36  ;;  %2333 = vmatmul.mubr.msk.f32.vlgmr.msra.gmra.mxu1 %vm264_vm1, %v697_v36 }
 0x400   :  { %v2681_v37 = vpop.f32.mrf.mxu1  ;;  %1161 = vmatprep.mubr.f32.mxu0 %v4635_v56  ;;  %1232 = vmatprep.mubr.f32.mxu1 %v4635_v56 }
 0x4bf   :  { %v770_v38 = vpop.f32.mrf.mxu0  ;;  %v841_v39 = vpop.f32.mrf.mxu1 }
 0x4c0   :  { %v771_v40 = vadd.f32 1e-05, %v770_v38  ;;  %v842_v41 = vadd.f32 1e-05, %v841_v39  ;;  %v3556_v38 = vld [vmem:[%s4537_s1 + $0x100] sm:$0xff]  ;;  %v3561_v39 = vld [vmem:[%s4537_s1 + $0x108] sm:$0xff] }
 0x4c1   :  { %v772_v42 = vpop.f32.mrf.mxu0  ;;  %v843_v43 = vpop.f32.mrf.mxu1  ;;  %4651 = vst [vmem:[#allocation6_spill] sm:$0xff] %v3556_v38  ;;  %4652 = vst [vmem:[#allocation7_spill] sm:$0xff] %v3561_v39 }
 0x4c2   :  { %2707 = vrsqrt.f32 %v771_v40  ;;  %v773_v44 = vadd.f32 1e-05, %v772_v42  ;;  %v844_v45 = vadd.f32 1e-05, %v843_v43 }
 0x4c3   :  { %2709 = vrsqrt.f32 %v842_v41 }
 0x4c4   :  { %2711 = vrsqrt.f32 %v773_v44 }
 0x4c5   :  { %2713 = vrsqrt.f32 %v844_v45 }
 0x4cf   :  { %v2708_v47 = vpop.eup %2707 }
 0x4d0   :  { %v2710_v48 = vpop.eup %2709  ;;  %v850_v49 = vmul.f32 %v2708_v47, %v483_v13  ;;  %v3577_v47 = vld [vmem:[%s4537_s1 + $0x118] sm:$0xff] }
 0x4d1   :  { %v2712_v50 = vpop.eup %2711  ;;  %v852_v51 = vmul.f32 %v2710_v48, %v485_v15  ;;  %4654 = vst [vmem:[#allocation9_spill] sm:$0xff] %v3577_v47 }
 0x4d2   :  { %v2714_v52 = vpop.eup %2713  ;;  %v851_v53 = vmul.f32 %v2712_v50, %v484_v19  ;;  %v859_v54 = vmul.f32 %v857_v46, %v850_v49 }
 0x4d3   :  { %v853_v60 = vmul.f32 %v2714_v52, %v486_v21  ;;  %v861_v62 = vmul.f32 %v857_v46, %v852_v51 }
 0x4d4   :  { %v860_v59 = vmul.f32 %v857_v46, %v851_v53  ;;  %v868_v0 = vadd.f32 %v866_v55, %v859_v54  ;;  %v3589_v54 = vld [vmem:[%s4537_s1 + $0xe0] sm:$0xff] }
 0x4d5   :  { %v862_v1 = vmul.f32 %v857_v46, %v853_v60  ;;  %v870_v3 = vadd.f32 %v866_v55, %v861_v62  ;;  %v3572_v46 = vld [vmem:[%s4537_s1 + $0x110] sm:$0xff]  ;;  %4655 = vst [vmem:[#allocation10_spill] sm:$0xff] %v3589_v54  ;;  %v3594_v60 = vld [vmem:[%s4537_s1 + $0xe8] sm:$0xff] }
 0x4d6   :  { %v869_v10 = vadd.f32 %v866_v55, %v860_v59  ;;  %v2334_v11 = vmul.f32 -1.442695, %v868_v0  ;;  %4653 = vst [vmem:[#allocation8_spill] sm:$0xff] %v3572_v46  ;;  %4656 = vst [vmem:[#allocation11_spill] sm:$0xff] %v3594_v60 }
 0x4d7   :  { %v871_v12 = vadd.f32 %v866_v55, %v862_v1  ;;  %v2336_v14 = vmul.f32 -1.442695, %v870_v3 }
 0x4d8   :  { %2715 = vpow2.f32 %v2334_v11  ;;  %v2335_v16 = vmul.f32 -1.442695, %v869_v10  ;;  %v3610_v11 = vld [vmem:[%s4537_s1 + $0xf8] sm:$0xff] }
 0x4d9   :  { %2717 = vpow2.f32 %v2336_v14  ;;  %v2337_v13 = vmul.f32 -1.442695, %v871_v12  ;;  %4658 = vst [vmem:[#allocation13_spill] sm:$0xff] %v3610_v11 }
 0x4da   :  { %2719 = vpow2.f32 %v2335_v16 }
 0x4db   :  { %2721 = vpow2.f32 %v2337_v13 }
 0x4e5   :  { %v2716_v15 = vpop.eup %2715 }
 0x4e6   :  { %v2718_v17 = vpop.eup %2717  ;;  %v884_v18 = vadd.f32 1.0, %v2716_v15 }
 0x4e7   :  { %v2720_v19 = vpop.eup %2719  ;;  %v886_v20 = vadd.f32 1.0, %v2718_v17 }
 0x4e8   :  { %v2722_v21 = vpop.eup %2721  ;;  %v885_v22 = vadd.f32 1.0, %v2720_v19  ;;  %2723 = vrcp.f32 %v884_v18  ;;  %v3622_v18 = vld [vmem:[%s4537_s1 + $0xc0] sm:$0xff]  ;;  %v3627_v19 = vld [vmem:[%s4537_s1 + $0xc8] sm:$0xff] }
 0x4e9   :  { %2725 = vrcp.f32 %v886_v20  ;;  %v887_v23 = vadd.f32 1.0, %v2722_v21  ;;  %4659 = vst [vmem:[#allocation15_spill] sm:$0xff] %v3622_v18  ;;  %4660 = vst [vmem:[#allocation17_spill] sm:$0xff] %v3627_v19 }
 0x4ea   :  { %2727 = vrcp.f32 %v885_v22 }
 0x4eb   :  { %2729 = vrcp.f32 %v887_v23 }
 0x4f5   :  { %v2724_v24 = vpop.eup %2723 }
 0x4f6   :  { %v2726_v25 = vpop.eup %2725  ;;  %v3472_v26 = vmul.f32 %v2724_v24, %v868_v0 }
 0x4f7   :  { %v2728_v27 = vpop.eup %2727  ;;  %v3474_v28 = vmul.f32 %v2726_v25, %v870_v3 }
 0x4f8   :  { %1066 = vrot.lane.b32.xlu1 %v3472_v26, %s2852_s7  ;;  %v3480_v29 = vmul.f32 %v2728_v27, %v869_v10  ;;  %v2730_v30 = vpop.eup %2729  ;;  %v3605_v10 = vld [vmem:[%s4537_s1 + $0xf0] sm:$0xff] }
 0x4f9   :  { %1070 = vrot.lane.b32.xlu0 %v3474_v28, %s2852_s7  ;;  %v3486_v31 = vmul.f32 %v2730_v30, %v871_v12  ;;  %4657 = vst [vmem:[#allocation12_spill] sm:$0xff] %v3605_v10  ;;  %v3638_v27 = vld [vmem:[%s4537_s1 + $0xd0] sm:$0xff]  ;;  %v3643_v30 = vld [vmem:[%s4537_s1 + $0xd8] sm:$0xff] }
 0x4fa   :  { %4661 = vst [vmem:[#allocation18_spill] sm:$0xff] %v3638_v27  ;;  %4662 = vst [vmem:[#allocation14_spill] sm:$0xff] %v3643_v30 }
 0x4fc   :  { %1068 = vrot.lane.b32.xlu1 %v3480_v29, %s2852_s7 }
 0x4fd   :  { %1044 = vrot.lane.b32.xlu0 %v3472_v26, %s2853_s8 }
 0x500   :  { %1072 = vrot.lane.b32.xlu1 %v3486_v31, %s2852_s7 }
 0x501   :  { %1048 = vrot.lane.b32.xlu0 %v3474_v28, %s2853_s8 }
 0x504   :  { %1046 = vrot.lane.b32.xlu1 %v3480_v29, %s2853_s8 }
 0x505   :  { %1022 = vrot.lane.b32.xlu0 %v3472_v26, %s2854_s18 }
 0x508   :  { %1050 = vrot.lane.b32.xlu1 %v3486_v31, %s2853_s8 }
 0x509   :  { %1026 = vrot.lane.b32.xlu0 %v3474_v28, %s2854_s18 }
 0x50c   :  { %1024 = vrot.lane.b32.xlu1 %v3480_v29, %s2854_s18 }
 0x50d   :  { %1000 = vrot.lane.b32.xlu0 %v3472_v26, %s2855_s19 }
 0x510   :  { %1028 = vrot.lane.b32.xlu1 %v3486_v31, %s2854_s18 }
 0x511   :  { %1004 = vrot.lane.b32.xlu0 %v3474_v28, %s2855_s19 }
 0x514   :  { %1002 = vrot.lane.b32.xlu1 %v3480_v29, %s2855_s19 }
 0x515   :  { %969 = vrot.lane.b32.xlu0 %v3472_v26, %s2856_s20 }
 0x518   :  { %1006 = vrot.lane.b32.xlu1 %v3486_v31, %s2855_s19 }
 0x519   :  { %973 = vrot.lane.b32.xlu0 %v3474_v28, %s2856_s20 }
 0x51c   :  { %971 = vrot.lane.b32.xlu1 %v3480_v29, %s2856_s20 }
 0x51d   :  { %947 = vrot.lane.b32.xlu0 %v3472_v26, %s2857_s21 }
 0x520   :  { %975 = vrot.lane.b32.xlu1 %v3486_v31, %s2856_s20 }
 0x521   :  { %951 = vrot.lane.b32.xlu0 %v3474_v28, %s2857_s21 }
 0x524   :  { %949 = vrot.lane.b32.xlu1 %v3480_v29, %s2857_s21 }
 0x525   :  { %925 = vrot.lane.b32.xlu0 %v3472_v26, %s2858_s22 }
 0x528   :  { %953 = vrot.lane.b32.xlu1 %v3486_v31, %s2857_s21 }
 0x529   :  { %929 = vrot.lane.b32.xlu0 %v3474_v28, %s2858_s22 }
 0x52c   :  { %927 = vrot.lane.b32.xlu1 %v3480_v29, %s2858_s22 }
 0x52d   :  { %902 = vrot.lane.b32.xlu0 %v3472_v26, %s2859_s23 }
 0x530   :  { %931 = vrot.lane.b32.xlu1 %v3486_v31, %s2858_s22 }
 0x531   :  { %906 = vrot.lane.b32.xlu0 %v3474_v28, %s2859_s23 }
 0x534   :  { %904 = vrot.lane.b32.xlu1 %v3480_v29, %s2859_s23 }
 0x535   :  { %1090 = vperm.xlu0 %2705, %v901_v32  }
 0x538   :  { %908 = vrot.lane.b32.xlu1 %v3486_v31, %s2859_s23 }
 0x539   :  { %1982 = vperm.xlu0 %2705, %v1241_v33  }
 0x56a   :  { %v1067_v36 = vpop.permute.xlu1 %1066 }
 0x56b   :  { %v1071_v37 = vpop.permute.xlu0 %1070 }
 0x56e   :  { %v1069_v40 = vpop.permute.xlu1 %1068 }
 0x56f   :  { %v1076_v41 = vsel %vm1074_vm2, %v1069_v40, %v1071_v37  ;;  %v1077_v42 = vsel %vm1074_vm2, %v1067_v36, %v1069_v40  ;;  %v1045_v43 = vpop.permute.xlu0 %1044 }
 0x570   :  { %v1084_v44 = vmul.f32 %v3556_v38, %v1077_v42  ;;  %v1085_v45 = vmul.f32 %v3561_v39, %v1076_v41  ;;  %v3655_v41 = vld [vmem:[%s4537_s1 + $0xa0] sm:$0xff]  ;;  %v3660_v42 = vld [vmem:[%s4537_s1 + $0xa8] sm:$0xff]  ;;  %v4146_v38 = vld [vmem:[%s4538_s2 + $0x18] sm:$0xff] }
 0x571   :  { %4663 = vst [vmem:[#allocation16_spill] sm:$0xff] %v3655_v41  ;;  %4664 = vst [vmem:[#allocation19_spill] sm:$0xff] %v3660_v42  ;;  %v4152_v39 = vld [vmem:[%s4538_s2 + $0x198] sm:$0xff] }
 0x572   :  { %v1073_v48 = vpop.permute.xlu1 %1072  ;;  %1111 = vmatprep.subr.mxu0 %v1085_v45  ;;  %4688 = vst [vmem:[#allocation43_spill] sm:$0xff] %v4146_v38  ;;  %4689 = vst [vmem:[#allocation44_spill] sm:$0xff] %v4152_v39 }
 0x573   :  { %v1075_v49 = vsel %vm1074_vm2, %v1071_v37, %v1073_v48  ;;  %v1078_v50 = vsel %vm1074_vm2, %v1073_v48, %v1067_v36  ;;  %v1049_v51 = vpop.permute.xlu0 %1048  ;;  %1112 = vmatpush1.msra.mxu0 %v1084_v44 }
 0x574   :  { %v1086_v52 = vmul.f32 %v3572_v46, %v1075_v49  ;;  %v1087_v53 = vmul.f32 %v3577_v47, %v1078_v50  ;;  %v3669_v49 = vld [vmem:[%s4537_s1 + $0x88] sm:$0xff]  ;;  %v4134_v47 = vld [vmem:[%s4538_s2 + $0x98] sm:$0xff]  ;;  %v4140_v46 = vld [vmem:[%s4538_s2 + $0x120] sm:$0xff] }
 0x575   :  { %4665 = vst [vmem:[#allocation20_spill] sm:$0xff] %v3669_v49  ;;  %4687 = vst [vmem:[#allocation42_spill] sm:$0xff] %v4134_v47 }
 0x576   :  { %1182 = vmatprep.subr.mxu1 %v1087_v53  ;;  %v1047_v62 = vpop.permute.xlu1 %1046  ;;  %v3681_v53 = vld [vmem:[%s4537_s1 + $0xb0] sm:$0xff] }
 0x577   :  { %v1054_v55 = vsel %vm1052_vm3, %v1047_v62, %v1049_v51  ;;  %v1055_v59 = vsel %vm1052_vm3, %v1045_v43, %v1047_v62  ;;  %v1023_v0 = vpop.permute.xlu0 %1022  ;;  %1183 = vmatpush1.msra.mxu1 %v1086_v52  ;;  %v3676_v52 = vld [vmem:[%s4537_s1 + $0x80] sm:$0xff]  ;;  %4667 = vst [vmem:[#allocation22_spill] sm:$0xff] %v3681_v53  ;;  %v3686_v62 = vld [vmem:[%s4537_s1 + $0xb8] sm:$0xff] }
 0x578   :  { %v1062_v1 = vmul.f32 %v3589_v54, %v1055_v59  ;;  %v1063_v3 = vmul.f32 %v3594_v60, %v1054_v55  ;;  %4666 = vst [vmem:[#allocation21_spill] sm:$0xff] %v3676_v52  ;;  %4668 = vst [vmem:[#allocation23_spill] sm:$0xff] %v3686_v62  ;;  %v997_v59 = vmul.f32 %v3669_v49, %v3480_v29  ;;  %v4056_v49 = vld [vmem:[%s4538_s2 + $0x1b8] sm:$0xff]  ;;  %v4122_v54 = vld [vmem:[%s4538_s2 + $0x20] sm:$0xff] }
 0x579   :  { %v4128_v60 = vld [vmem:[%s4538_s2 + $0x1a0] sm:$0xff] }
 0x57a   :  { %v1051_v12 = vpop.permute.xlu1 %1050  ;;  %1113 = vmatprep.subr.mxu0 %v1063_v3 }
 0x57b   :  { %v1053_v14 = vsel %vm1052_vm3, %v1049_v51, %v1051_v12  ;;  %v1056_v16 = vsel %vm1052_vm3, %v1051_v12, %v1045_v43  ;;  %v1027_v13 = vpop.permute.xlu0 %1026  ;;  %1114 = vmatpush1.msra.mxu0 %v1062_v1  ;;  %v996_v12 = vmul.f32 %v3676_v52, %v3472_v26  ;;  %v3712_v26 = vld [vmem:[%s4537_s1 + $0x68] sm:$0xff]  ;;  %v4050_v52 = vld [vmem:[%s4538_s2 + $0x38] sm:$0xff] }
 0x57c   :  { %v1064_v15 = vmul.f32 %v3605_v10, %v1053_v14  ;;  %v1065_v17 = vmul.f32 %v3610_v11, %v1056_v16  ;;  %v3699_v14 = vld [vmem:[%s4537_s1 + $0x98] sm:$0xff]  ;;  %4671 = vst [vmem:[#allocation26_spill] sm:$0xff] %v3712_v26  ;;  %v4110_v11 = vld [vmem:[%s4538_s2 + $0xa0] sm:$0xff]  ;;  %v4116_v10 = vld [vmem:[%s4538_s2 + $0x128] sm:$0xff] }
 0x57d   :  { %4669 = vst [vmem:[#allocation24_spill] sm:$0xff] %v3699_v14 }
 0x57e   :  { %v1025_v20 = vpop.permute.xlu1 %1024  ;;  %1184 = vmatprep.subr.mxu1 %v1065_v17  ;;  %v999_v17 = vmul.f32 %v3699_v14, %v3486_v31  ;;  %v3729_v31 = vld [vmem:[%s4537_s1 + $0x78] sm:$0xff]  ;;  %v4044_v14 = vld [vmem:[%s4538_s2 + $0x140] sm:$0xff] }
 0x57f   :  { %v1032_v21 = vsel %vm1030_vm4, %v1025_v20, %v1027_v13  ;;  %v1033_v22 = vsel %vm1030_vm4, %v1023_v0, %v1025_v20  ;;  %v1001_v23 = vpop.permute.xlu0 %1000  ;;  %1185 = vmatpush1.msra.mxu1 %v1064_v15  ;;  %4673 = vst [vmem:[#allocation28_spill] sm:$0xff] %v3729_v31 }
 0x580   :  { %v1040_v24 = vmul.f32 %v3622_v18, %v1033_v22  ;;  %v1041_v25 = vmul.f32 %v3627_v19, %v1032_v21  ;;  %v4098_v18 = vld [vmem:[%s4538_s2 + $0x28] sm:$0xff] }
 0x581   :  { %v4104_v19 = vld [vmem:[%s4538_s2 + $0x1a8] sm:$0xff] }
 0x582   :  { %v1029_v32 = vpop.permute.xlu1 %1028  ;;  %1115 = vmatprep.subr.mxu0 %v1041_v25  ;;  %v3734_v25 = vld [vmem:[%s4537_s1 + $0x70] sm:$0xff] }
 0x583   :  { %v1031_v33 = vsel %vm1030_vm4, %v1027_v13, %v1029_v32  ;;  %v1034_v34 = vsel %vm1030_vm4, %v1029_v32, %v1023_v0  ;;  %v1005_v36 = vpop.permute.xlu0 %1004  ;;  %1116 = vmatpush1.msra.mxu0 %v1040_v24  ;;  %v3707_v13 = vld [vmem:[%s4537_s1 + $0x90] sm:$0xff]  ;;  %v3724_v24 = vld [vmem:[%s4537_s1 + $0x60] sm:$0xff]  ;;  %4674 = vst [vmem:[#allocation29_spill] sm:$0xff] %v3734_v25 }
 0x584   :  { %v1042_v37 = vmul.f32 %v3638_v27, %v1031_v33  ;;  %v1043_v40 = vmul.f32 %v3643_v30, %v1034_v34  ;;  %4670 = vst [vmem:[#allocation25_spill] sm:$0xff] %v3707_v13  ;;  %v998_v22 = vmul.f32 %v3707_v13, %v3474_v28  ;;  %4672 = vst [vmem:[#allocation27_spill] sm:$0xff] %v3724_v24  ;;  %v4038_v13 = vld [vmem:[%s4538_s2 + $0xb8] sm:$0xff]  ;;  %v4086_v30 = vld [vmem:[%s4538_s2 + $0xa8] sm:$0xff] }
 0x585   :  { %v4092_v27 = vld [vmem:[%s4538_s2 + $0x130] sm:$0xff] }
 0x586   :  { %v1003_v43 = vpop.permute.xlu1 %1002  ;;  %1186 = vmatprep.subr.mxu1 %v1043_v40 }
 0x587   :  { %v1010_v44 = vsel %vm1008_vm5, %v1003_v43, %v1005_v36  ;;  %v1011_v45 = vsel %vm1008_vm5, %v1001_v23, %v1003_v43  ;;  %v970_v48 = vpop.permute.xlu0 %969  ;;  %1187 = vmatpush1.msra.mxu1 %v1042_v37 }
 0x588   :  { %v1018_v50 = vmul.f32 %v3655_v41, %v1011_v45  ;;  %v1019_v51 = vmul.f32 %v3660_v42, %v1010_v44  ;;  %v3749_v44 = vld [vmem:[%s4537_s1 + $0x48] sm:$0xff]  ;;  %v4074_v41 = vld [vmem:[%s4538_s2 + $0x30] sm:$0xff] }
 0x589   :  { %4675 = vst [vmem:[#allocation30_spill] sm:$0xff] %v3749_v44  ;;  %v4080_v42 = vld [vmem:[%s4538_s2 + $0x1b0] sm:$0xff] }
 0x58a   :  { %v1007_v55 = vpop.permute.xlu1 %1006  ;;  %1117 = vmatprep.subr.mxu0 %v1019_v51 }
 0x58b   :  { %v1009_v0 = vsel %vm1008_vm5, %v1005_v36, %v1007_v55  ;;  %v1012_v1 = vsel %vm1008_vm5, %v1007_v55, %v1001_v23  ;;  %v974_v3 = vpop.permute.xlu0 %973  ;;  %1118 = vmatpush1.msra.mxu0 %v1018_v50  ;;  %v3757_v55 = vld [vmem:[%s4537_s1 + $0x40] sm:$0xff] }
 0x58c   :  { %v1020_v16 = vmul.f32 %v3681_v53, %v1009_v0  ;;  %v1021_v29 = vmul.f32 %v3686_v62, %v1012_v1  ;;  %1119 = vmatprep.subr.mxu0 %v997_v59  ;;  %4676 = vst [vmem:[#allocation31_spill] sm:$0xff] %v3757_v55  ;;  %v3762_v59 = vld [vmem:[%s4537_s1 + $0x58] sm:$0xff]  ;;  %v3767_v0 = vld [vmem:[%s4537_s1 + $0x50] sm:$0xff] }
 0x58d   :  { %1120 = vmatpush1.msra.mxu0 %v996_v12  ;;  %4677 = vst [vmem:[#allocation32_spill] sm:$0xff] %v3762_v59  ;;  %4678 = vst [vmem:[#allocation33_spill] sm:$0xff] %v3767_v0  ;;  %v4062_v62 = vld [vmem:[%s4538_s2 + $0xb0] sm:$0xff]  ;;  %v4068_v53 = vld [vmem:[%s4538_s2 + $0x138] sm:$0xff] }
 0x58e   :  { %v972_v15 = vpop.permute.xlu1 %971  ;;  %1188 = vmatprep.subr.mxu1 %v1021_v29 }
 0x58f   :  { %v980_v20 = vsel %vm977_vm6, %v970_v48, %v972_v15  ;;  %v948_v21 = vpop.permute.xlu0 %947  ;;  %1189 = vmatpush1.msra.mxu1 %v1020_v16  ;;  %v979_v28 = vsel %vm977_vm6, %v972_v15, %v974_v3 }
 0x590   :  { %v988_v23 = vmul.f32 %v3712_v26, %v980_v20  ;;  %1190 = vmatprep.subr.mxu1 %v999_v17  ;;  %v989_v43 = vmul.f32 %v3734_v25, %v979_v28  ;;  %v4014_v25 = vld [vmem:[%s4538_s2 + $0xc0] sm:$0xff] }
 0x591   :  { %1191 = vmatpush1.msra.mxu1 %v998_v22  ;;  %v3782_v22 = vld [vmem:[%s4537_s1 + $0x28] sm:$0xff]  ;;  %v4032_v26 = vld [vmem:[%s4538_s2 + $0x1c0] sm:$0xff] }
 0x592   :  { %v976_v32 = vpop.permute.xlu1 %975  ;;  %1121 = vmatprep.subr.mxu0 %v988_v23  ;;  %4679 = vst [vmem:[#allocation34_spill] sm:$0xff] %v3782_v22 }
 0x593   :  { %v978_v33 = vsel %vm977_vm6, %v974_v3, %v976_v32  ;;  %v981_v34 = vsel %vm977_vm6, %v976_v32, %v970_v48  ;;  %v952_v36 = vpop.permute.xlu0 %951  ;;  %v3790_v32 = vld [vmem:[%s4537_s1 + $0x20] sm:$0xff] }
 0x594   :  { %v987_v37 = vmul.f32 %v3724_v24, %v981_v34  ;;  %v990_v40 = vmul.f32 %v3729_v31, %v978_v33  ;;  %4680 = vst [vmem:[#allocation35_spill] sm:$0xff] %v3790_v32  ;;  %v3795_v33 = vld [vmem:[%s4537_s1 + $0x38] sm:$0xff]  ;;  %v3800_v34 = vld [vmem:[%s4537_s1 + $0x30] sm:$0xff]  ;;  %v4020_v31 = vld [vmem:[%s4538_s2 + $0x148] sm:$0xff] }
 0x595   :  { %4681 = vst [vmem:[#allocation36_spill] sm:$0xff] %v3795_v33  ;;  %4682 = vst [vmem:[#allocation37_spill] sm:$0xff] %v3800_v34  ;;  %v4026_v24 = vld [vmem:[%s4538_s2 + $0x40] sm:$0xff] }
 0x596   :  { %v950_v45 = vpop.permute.xlu1 %949  ;;  %1122 = vmatpush1.msra.mxu0 %v987_v37  ;;  %1192 = vmatprep.subr.mxu1 %v990_v40 }
 0x597   :  { %v958_v48 = vsel %vm955_vm7, %v948_v21, %v950_v45  ;;  %v926_v50 = vpop.permute.xlu0 %925  ;;  %1193 = vmatpush1.msra.mxu1 %v989_v43  ;;  %v957_v1 = vsel %vm955_vm7, %v950_v45, %v952_v36 }
 0x598   :  { %v966_v51 = vmul.f32 %v3749_v44, %v958_v48  ;;  %v967_v17 = vmul.f32 %v3767_v0, %v957_v1  ;;  %v3990_v0 = vld [vmem:[%s4538_s2 + $0xc8] sm:$0xff] }
 0x599   :  { %v4008_v44 = vld [vmem:[%s4538_s2 + $0x1c8] sm:$0xff] }
 0x59a   :  { %v954_v3 = vpop.permute.xlu1 %953  ;;  %1123 = vmatprep.subr.mxu0 %v966_v51 }
 0x59b   :  { %v956_v12 = vsel %vm955_vm7, %v952_v36, %v954_v3  ;;  %v959_v16 = vsel %vm955_vm7, %v954_v3, %v948_v21  ;;  %v930_v20 = vpop.permute.xlu0 %929  ;;  %v3815_v3 = vld [vmem:[%s4537_s1 + $0x8] sm:$0xff] }
 0x59c   :  { %v965_v29 = vmul.f32 %v3757_v55, %v959_v16  ;;  %v968_v15 = vmul.f32 %v3762_v59, %v956_v12  ;;  %4683 = vst [vmem:[#allocation38_spill] sm:$0xff] %v3815_v3  ;;  %v3996_v59 = vld [vmem:[%s4538_s2 + $0x150] sm:$0xff]  ;;  %v4002_v55 = vld [vmem:[%s4538_s2 + $0x48] sm:$0xff] }
 0x59e   :  { %v928_v23 = vpop.permute.xlu1 %927  ;;  %1124 = vmatpush1.msra.mxu0 %v965_v29  ;;  %1194 = vmatprep.subr.mxu1 %v968_v15  ;;  %v3823_v15 = vld [vmem:[%s4537_s1] sm:$0xff] }
 0x59f   :  { %v936_v21 = vsel %vm933_vm8, %v926_v50, %v928_v23  ;;  %1195 = vmatpush1.msra.mxu1 %v967_v17  ;;  %v935_v36 = vsel %vm933_vm8, %v928_v23, %v930_v20  ;;  %v903_v40 = vpop.permute.xlu0 %902  ;;  %4684 = vst [vmem:[#allocation39_spill] sm:$0xff] %v3823_v15  ;;  %v3828_v17 = vld [vmem:[%s4537_s1 + $0x18] sm:$0xff] }
 0x5a0   :  { %v944_v28 = vmul.f32 %v3782_v22, %v936_v21  ;;  %v945_v1 = vmul.f32 %v3800_v34, %v935_v36  ;;  %4685 = vst [vmem:[#allocation40_spill] sm:$0xff] %v3828_v17  ;;  %v3966_v34 = vld [vmem:[%s4538_s2 + $0xd0] sm:$0xff] }
 0x5a1   :  { %v3984_v22 = vld [vmem:[%s4538_s2 + $0x1d0] sm:$0xff] }
 0x5a2   :  { %v932_v37 = vpop.permute.xlu1 %931  ;;  %1125 = vmatprep.subr.mxu0 %v944_v28 }
 0x5a3   :  { %v934_v43 = vsel %vm933_vm8, %v930_v20, %v932_v37  ;;  %v937_v45 = vsel %vm933_vm8, %v932_v37, %v926_v50  ;;  %v907_v29 = vpop.permute.xlu0 %906  ;;  %v3833_v20 = vld [vmem:[%s4537_s1 + $0x10] sm:$0xff] }
 0x5a4   :  { %v943_v48 = vmul.f32 %v3790_v32, %v937_v45  ;;  %v946_v51 = vmul.f32 %v3795_v33, %v934_v43  ;;  %4686 = vst [vmem:[#allocation41_spill] sm:$0xff] %v3833_v20  ;;  %v900_v45 = vld [vmem:[%s4540_s4] sm:$0xff]  ;;  %v3972_v33 = vld [vmem:[%s4538_s2 + $0x158] sm:$0xff]  ;;  %v3978_v32 = vld [vmem:[%s4538_s2 + $0x50] sm:$0xff] }
 0x5a6   :  { %v905_v12 = vpop.permute.xlu1 %904  ;;  %1126 = vmatpush1.msra.mxu0 %v943_v48  ;;  %1196 = vmatprep.subr.mxu1 %v946_v51  ;;  %v3858_v51 = vld [vmem:[%s4538_s2 + $0x78] sm:$0xff] }
 0x5a7   :  { %v915_v16 = vsel %vm912_vm9, %v903_v40, %v905_v12  ;;  %1197 = vmatpush1.msra.mxu1 %v945_v1  ;;  %v914_v23 = vsel %vm912_vm9, %v905_v12, %v907_v29  ;;  %v3864_v1 = vld [vmem:[%s4538_s2 + $0x1f8] sm:$0xff]  ;;  %v3870_v12 = vld [vmem:[%s4538_s2 + $0xf0] sm:$0xff] }
 0x5a8   :  { %v922_v50 = vmul.f32 %v3815_v3, %v915_v16  ;;  %v923_v48 = vmul.f32 %v3833_v20, %v914_v23  ;;  %v3876_v16 = vld [vmem:[%s4538_s2 + $0x178] sm:$0xff]  ;;  %v3894_v23 = vld [vmem:[%s4538_s2 + $0xe8] sm:$0xff] }
 0x5a9   :  { %v3942_v20 = vld [vmem:[%s4538_s2 + $0xd8] sm:$0xff] }
 0x5aa   :  { %v909_v21 = vpop.permute.xlu1 %908  ;;  %1127 = vmatprep.subr.mxu0 %v922_v50  ;;  %v3882_v50 = vld [vmem:[%s4538_s2 + $0x70] sm:$0xff]  ;;  %v3960_v3 = vld [vmem:[%s4538_s2 + $0x1d8] sm:$0xff] }
 0x5ab   :  { %v913_v28 = vsel %vm912_vm9, %v907_v29, %v909_v21  ;;  %v916_v36 = vsel %vm912_vm9, %v909_v21, %v903_v40  ;;  %v3852_v40 = vld [vmem:[%s4538_s2 + $0xf8] sm:$0xff]  ;;  %v3888_v29 = vld [vmem:[%s4538_s2 + $0x1f0] sm:$0xff] }
 0x5ac   :  { %v921_v37 = vmul.f32 %v3823_v15, %v916_v36  ;;  %v924_v43 = vmul.f32 %v3828_v17, %v913_v28  ;;  %v3900_v21 = vld [vmem:[%s4538_s2 + $0x170] sm:$0xff]  ;;  %v3906_v28 = vld [vmem:[%s4538_s2 + $0x68] sm:$0xff]  ;;  %v3948_v17 = vld [vmem:[%s4538_s2 + $0x160] sm:$0xff] }
 0x5ad   :  { %v3912_v36 = vld [vmem:[%s4538_s2 + $0x1e8] sm:$0xff]  ;;  %v3954_v15 = vld [vmem:[%s4538_s2 + $0x58] sm:$0xff] }
 0x5ae   :  { %1128 = vmatpush1.msra.mxu0 %v921_v37  ;;  %1198 = vmatprep.subr.mxu1 %v924_v43  ;;  %v3918_v37 = vld [vmem:[%s4538_s2 + $0xe0] sm:$0xff]  ;;  %v3924_v43 = vld [vmem:[%s4538_s2 + $0x168] sm:$0xff] }
 0x5af   :  { %2370 = vmatmul.mubr.msk.f32.vlgmr.msra.gmra.mxu0 %vm1093_vm10, %v900_v45  ;;  %1199 = vmatpush1.msra.mxu1 %v923_v48  ;;  %v3936_v48 = vld [vmem:[%s4538_s2 + $0x1e0] sm:$0xff] }
 0x5b0   :  { %2371 = vmatmul.mubr.msk.f32.vlgmr.msra.gmra.mxu1 %vm1093_vm10, %v900_v45  ;;  %2528 = vmatprep.subr.mxu0 %v3852_v40  ;;  %v3930_v45 = vld [vmem:[%s4538_s2 + $0x60] sm:$0xff] }
 0x5b1   :  { %2529 = vmatpush3.msra.mxu0 %v3858_v51  ;;  %2563 = vmatprep.subr.mxu1 %v3864_v1 }
 0x5b2   :  { %2530 = vmatprep.subr.mxu0 %v3870_v12  ;;  %2564 = vmatpush3.msra.mxu1 %v3876_v16 }
 0x5b3   :  { %2531 = vmatpush3.msra.mxu0 %v3882_v50  ;;  %2565 = vmatprep.subr.mxu1 %v3888_v29 }
 0x5b4   :  { %2532 = vmatprep.subr.mxu0 %v3894_v23  ;;  %2566 = vmatpush3.msra.mxu1 %v3900_v21 }
 0x5b5   :  { %2533 = vmatpush3.msra.mxu0 %v3906_v28  ;;  %2567 = vmatprep.subr.mxu1 %v3912_v36 }
 0x5b6   :  { %2534 = vmatprep.subr.mxu0 %v3918_v37  ;;  %2568 = vmatpush3.msra.mxu1 %v3924_v43 }
 0x5b7   :  { %2535 = vmatpush3.msra.mxu0 %v3930_v45  ;;  %2569 = vmatprep.subr.mxu1 %v3936_v48 }
 0x5b8   :  { %2536 = vmatprep.subr.mxu0 %v3942_v20  ;;  %2570 = vmatpush3.msra.mxu1 %v3948_v17 }
 0x5b9   :  { %2537 = vmatpush3.msra.mxu0 %v3954_v15  ;;  %2571 = vmatprep.subr.mxu1 %v3960_v3 }
 0x5ba   :  { %2538 = vmatprep.subr.mxu0 %v3966_v34  ;;  %2572 = vmatpush3.msra.mxu1 %v3972_v33 }
 0x5bb   :  { %2539 = vmatpush3.msra.mxu0 %v3978_v32  ;;  %2573 = vmatprep.subr.mxu1 %v3984_v22 }
 0x5bc   :  { %2540 = vmatprep.subr.mxu0 %v3990_v0  ;;  %2574 = vmatpush3.msra.mxu1 %v3996_v59 }
 0x5bd   :  { %2541 = vmatpush3.msra.mxu0 %v4002_v55  ;;  %2575 = vmatprep.subr.mxu1 %v4008_v44 }
 0x5be   :  { %2542 = vmatprep.subr.mxu0 %v4014_v25  ;;  %2576 = vmatpush3.msra.mxu1 %v4020_v31 }
 0x5bf   :  { %2543 = vmatpush3.msra.mxu0 %v4026_v24  ;;  %2577 = vmatprep.subr.mxu1 %v4032_v26 }
 0x5c0   :  { %2544 = vmatprep.subr.mxu0 %v4038_v13  ;;  %2578 = vmatpush3.msra.mxu1 %v4044_v14 }
 0x5c1   :  { %2545 = vmatpush3.msra.mxu0 %v4050_v52  ;;  %2579 = vmatprep.subr.mxu1 %v4056_v49 }
 0x5c2   :  { %2546 = vmatprep.subr.mxu0 %v4062_v62  ;;  %2580 = vmatpush3.msra.mxu1 %v4068_v53 }
 0x5c3   :  { %2547 = vmatpush3.msra.mxu0 %v4074_v41  ;;  %2581 = vmatprep.subr.mxu1 %v4080_v42 }
 0x5c4   :  { %2548 = vmatprep.subr.mxu0 %v4086_v30  ;;  %2582 = vmatpush3.msra.mxu1 %v4092_v27 }
 0x5c5   :  { %2549 = vmatpush3.msra.mxu0 %v4098_v18  ;;  %2583 = vmatprep.subr.mxu1 %v4104_v19 }
 0x5c6   :  { %2550 = vmatprep.subr.mxu0 %v4110_v11  ;;  %2584 = vmatpush3.msra.mxu1 %v4116_v10 }
 0x5c7   :  { %2551 = vmatpush3.msra.mxu0 %v4122_v54  ;;  %2585 = vmatprep.subr.mxu1 %v4128_v60 }
 0x5c8   :  { %2552 = vmatprep.subr.mxu0 %v4134_v47  ;;  %2586 = vmatpush3.msra.mxu1 %v4140_v46  ;;  %v4164_v47 = vld [vmem:[%s4538_s2 + $0x118] sm:$0xff] }
 0x5c9   :  { %2553 = vmatpush3.msra.mxu0 %v4146_v38  ;;  %2587 = vmatprep.subr.mxu1 %v4152_v39  ;;  %4691 = vst [vmem:[#allocation46_spill] sm:$0xff] %v4164_v47  ;;  %v4170_v38 = vld [vmem:[%s4538_s2 + $0x10] sm:$0xff] }
 0x5ca   :  { %2554 = vmatprep.subr.mxu0 %v4158_v35  ;;  %2588 = vmatpush3.msra.mxu1 %v4164_v47  ;;  %4692 = vst [vmem:[#allocation47_spill] sm:$0xff] %v4170_v38  ;;  %v4176_v39 = vld [vmem:[%s4538_s2 + $0x190] sm:$0xff] }
 0x5cb   :  { %2555 = vmatpush3.msra.mxu0 %v4170_v38  ;;  %4693 = vst [vmem:[#allocation48_spill] sm:$0xff] %v4176_v39  ;;  %2589 = vmatprep.subr.mxu1 %v4176_v39  ;;  %v4183_v35 = vld [vmem:[%s4538_s2 + $0x110] sm:$0xff]  ;;  %v4190_v38 = vld [vmem:[%s4538_s2 + $0x188] sm:$0xff] }
 0x5cc   :  { %2556 = vmatprep.subr.mxu0 %v4638_v2  ;;  %4694 = vst [vmem:[#allocation49_spill] sm:$0xff] %v4183_v35  ;;  %2590 = vmatpush3.msra.mxu1 %v4183_v35  ;;  %4695 = vst [vmem:[#allocation50_spill] sm:$0xff] %v4190_v38  ;;  %v1091_v35 = vpop.permute.xlu0 %1090 }
 0x5cd   :  { %2557 = vmatpush3.msra.mxu0 %v4640_v4  ;;  %2591 = vmatprep.subr.mxu1 %v4190_v38 }
 0x5ce   :  { %2558 = vmatprep.subr.mxu0 %v4642_v6  ;;  %2592 = vmatpush3.msra.mxu1 %v4641_v5 }
 0x5cf   :  { %2559 = vmatpush3.msra.mxu0 %v4644_v8  ;;  %2593 = vmatprep.subr.mxu1 %v4643_v7 }
 0x5d0   :  { %2594 = vmatpush3.msra.mxu1 %v4645_v9  ;;  %2682 = vmatprep.subr.mxu0 %v4635_v56 }
 0x5d1   :  { %1488 = vmatprep.subr.mxu1 %v3352_v63 }
 0x66f   :  { %v1163_v2 = vpop.f32.mrf.mxu0 }
 0x670   :  { %v1234_v4 = vpop.f32.mrf.mxu1  ;;  %v4202_v6 = vadd.f32 %v1163_v2, %v1091_v35 }
 0x671   :  { %v1165_v39 = vpop.f32.mrf.mxu0  ;;  %v4206_v8 = vadd.f32 %v1234_v4, %v1091_v35  ;;  %v4220_v4 = vld [vmem:[%s4547_s11] sm:$0xff] }
 0x672   :  { %v4200_v47 = vadd.f32 %v1165_v39, %v1091_v35  ;;  %v1236_v38 = vpop.f32.mrf.mxu1 }
 0x673   :  { %v4204_v5 = vadd.f32 %v1236_v38, %v1091_v35 }
 0x674   :  { %1306 = vmatprep.mubr.f32.mxu0 %v4200_v47 }
 0x675   :  { %1307 = vmatmul.mubr.f32.vlgmr.msra.gmra.mxu0 %v4202_v6  ;;  %1376 = vmatprep.mubr.f32.mxu1 %v4204_v5 }
 0x676   :  { %1377 = vmatmul.mubr.f32.vlgmr.msra.gmra.mxu1 %v4206_v8  ;;  %2684 = vmatprep.mubr.msk.f32.mxu0 %vm2850_vm0, %v4635_v56 }
 0x677   :  { %1489 = vmatpush1.msra.mxu1 %v3372_v57  ;;  %1522 = vmatprep.mubr.f32.mxu1 %v4635_v56 }
 0x678   :  { %2600 = vmatprep.subr.mxu1 %v3852_v40 }
 0x735   :  { %v2560_v63 = vpop.f32.mrf.mxu0 }
 0x736   :  { %v2595_v7 = vpop.f32.mrf.mxu1 }
 0x737   :  { %v2561_v9 = vpop.f32.mrf.mxu0 }
 0x738   :  { %v2562_v35 = vadd.f32 %v2561_v9, %v2560_v63  ;;  %v2596_v38 = vpop.f32.mrf.mxu1 }
 0x739   :  { %v2597_v39 = vadd.f32 %v2596_v38, %v2595_v7 }
 0x73b   :  { %v1379_v2 = vadd.f32 %v2597_v39, %v2562_v35  ;;  %v1983_v39 = vpop.permute.xlu0 %1982 }
 0x73d   :  { %2683 = vmatpush3.msra.mxu0 %v1379_v2 }
 0x73e   :  { %2685 = vmatmul.mubr.msk.f32.vlgmr.msra.gmra.mxu0 %vm264_vm1, %v4220_v4  ;;  %1559 = vmatprep.subr.mxu0 %v3363_v61  ;;  %v4696_v61 = vld [vmem:[#allocation42_spill] sm:$0xff] }
 0x73f   :  { %1560 = vmatpush1.msra.mxu0 %v3377_v58  ;;  %1593 = vmatprep.mubr.f32.mxu0 %v4635_v56  ;;  %v4697_v58 = vld [vmem:[#allocation44_spill] sm:$0xff] }
 0x740   :  { %2635 = vmatprep.subr.mxu0 %v3864_v1  ;;  %v2821_v1 = vld [vmem:[%s4539_s3 + $0x18] sm:$0xff] }
 0x7fe   :  { %v1451_v57 = vpop.f32.mrf.mxu0 }
 0x7ff   :  { %2373 = vmatmul.mubr.msk.f32.vlgmr.msra.gmra.mxu1 %vm264_vm1, %v1451_v57  ;;  %2374 = vmatmul.mubr.msk.f32.vlgmr.msra.gmra.mxu0 %vm264_vm1, %v1451_v57 }
 0x800   :  { %v2686_v40 = vpop.f32.mrf.mxu0  ;;  %2601 = vmatpush3.msra.mxu1 %v3858_v51  ;;  %2636 = vmatpush3.msra.mxu0 %v3876_v16  ;;  %v1240_v16 = vld [vmem:[%s4548_s12] sm:$0xff] }
 0x801   :  { %2602 = vmatprep.subr.mxu1 %v3870_v12  ;;  %2637 = vmatprep.subr.mxu0 %v3888_v29  ;;  %v2822_v12 = vld [vmem:[%s4539_s3 + $0x10] sm:$0xff] }
 0x802   :  { %2603 = vmatpush3.msra.mxu1 %v3882_v50  ;;  %2638 = vmatpush3.msra.mxu0 %v3900_v21 }
 0x803   :  { %2604 = vmatprep.subr.mxu1 %v3894_v23  ;;  %2639 = vmatprep.subr.mxu0 %v3912_v36 }
 0x804   :  { %2605 = vmatpush3.msra.mxu1 %v3906_v28  ;;  %2640 = vmatpush3.msra.mxu0 %v3924_v43 }
 0x805   :  { %2606 = vmatprep.subr.mxu1 %v3918_v37  ;;  %2641 = vmatprep.subr.mxu0 %v3936_v48 }
 0x806   :  { %2607 = vmatpush3.msra.mxu1 %v3930_v45  ;;  %2642 = vmatpush3.msra.mxu0 %v3948_v17 }
 0x807   :  { %2608 = vmatprep.subr.mxu1 %v3942_v20  ;;  %2643 = vmatprep.subr.mxu0 %v3960_v3 }
 0x808   :  { %2609 = vmatpush3.msra.mxu1 %v3954_v15  ;;  %2644 = vmatpush3.msra.mxu0 %v3972_v33  ;;  %v2820_v33 = vld [vmem:[%s4539_s3] sm:$0xff] }
 0x809   :  { %2610 = vmatprep.subr.mxu1 %v3966_v34  ;;  %2645 = vmatprep.subr.mxu0 %v3984_v22 }
 0x80a   :  { %2611 = vmatpush3.msra.mxu1 %v3978_v32  ;;  %2646 = vmatpush3.msra.mxu0 %v3996_v59 }
 0x80b   :  { %2612 = vmatprep.subr.mxu1 %v3990_v0  ;;  %2647 = vmatprep.subr.mxu0 %v4008_v44 }
 0x80c   :  { %2613 = vmatpush3.msra.mxu1 %v4002_v55  ;;  %2648 = vmatpush3.msra.mxu0 %v4020_v31 }
 0x80d   :  { %2614 = vmatprep.subr.mxu1 %v4014_v25  ;;  %2649 = vmatprep.subr.mxu0 %v4032_v26 }
 0x80e   :  { %2615 = vmatpush3.msra.mxu1 %v4026_v24  ;;  %2650 = vmatpush3.msra.mxu0 %v4044_v14 }
 0x80f   :  { %2616 = vmatprep.subr.mxu1 %v4038_v13  ;;  %2651 = vmatprep.subr.mxu0 %v4056_v49  ;;  %v2816_v49 = vld [vmem:[%s4538_s2 + $0x180] sm:$0xff] }
 0x810   :  { %2617 = vmatpush3.msra.mxu1 %v4050_v52  ;;  %2652 = vmatpush3.msra.mxu0 %v4068_v53  ;;  %v2817_v52 = vld [vmem:[%s4538_s2] sm:$0xff] }
 0x811   :  { %2618 = vmatprep.subr.mxu1 %v4062_v62  ;;  %2653 = vmatprep.subr.mxu0 %v4080_v42  ;;  %v2815_v42 = vld [vmem:[%s4538_s2 + $0x80] sm:$0xff]  ;;  %v2819_v62 = vld [vmem:[%s4539_s3 + $0x8] sm:$0xff] }
 0x812   :  { %2619 = vmatpush3.msra.mxu1 %v4074_v41  ;;  %2654 = vmatpush3.msra.mxu0 %v4092_v27  ;;  %v4698_v27 = vld [vmem:[#allocation43_spill] sm:$0xff]  ;;  %v2814_v41 = vld [vmem:[%s4538_s2 + $0x108] sm:$0xff]  ;;  %v2818_v53 = vld [vmem:[%s4538_s2 + $0x100] sm:$0xff] }
 0x813   :  { %2620 = vmatprep.subr.mxu1 %v4086_v30  ;;  %2655 = vmatprep.subr.mxu0 %v4104_v19  ;;  %v4699_v30 = vld [vmem:[#allocation46_spill] sm:$0xff]  ;;  %v4700_v19 = vld [vmem:[#allocation45_spill] sm:$0xff] }
 0x814   :  { %2621 = vmatpush3.msra.mxu1 %v4098_v18  ;;  %2656 = vmatpush3.msra.mxu0 %v4116_v10  ;;  %v4701_v18 = vld [vmem:[#allocation48_spill] sm:$0xff]  ;;  %v4702_v10 = vld [vmem:[#allocation47_spill] sm:$0xff] }
 0x815   :  { %2622 = vmatprep.subr.mxu1 %v4110_v11  ;;  %2657 = vmatprep.subr.mxu0 %v4128_v60  ;;  %v4703_v11 = vld [vmem:[#allocation49_spill] sm:$0xff]  ;;  %v2813_v60 = vld [vmem:[%s4538_s2 + $0x8] sm:$0xff] }
 0x816   :  { %2623 = vmatpush3.msra.mxu1 %v4122_v54  ;;  %2658 = vmatpush3.msra.mxu0 %v4140_v46  ;;  %v2812_v46 = vld [vmem:[%s4538_s2 + $0x88] sm:$0xff] }
 0x817   :  { %2624 = vmatprep.subr.mxu1 %v4696_v61  ;;  %2659 = vmatprep.subr.mxu0 %v4697_v58  ;;  %v4704_v54 = vld [vmem:[#allocation50_spill] sm:$0xff] }
 0x818   :  { %2625 = vmatpush3.msra.mxu1 %v4698_v27  ;;  %2660 = vmatpush3.msra.mxu0 %v4699_v30 }
 0x819   :  { %2626 = vmatprep.subr.mxu1 %v4700_v19  ;;  %2661 = vmatprep.subr.mxu0 %v4701_v18 }
 0x81a   :  { %2627 = vmatpush3.msra.mxu1 %v4702_v10  ;;  %2662 = vmatpush3.msra.mxu0 %v4703_v11 }
 0x81b   :  { %2628 = vmatprep.subr.mxu1 %v2812_v46  ;;  %2663 = vmatprep.subr.mxu0 %v4704_v54 }
 0x81c   :  { %2629 = vmatpush3.msra.mxu1 %v2813_v60  ;;  %2664 = vmatpush3.msra.mxu0 %v2814_v41 }
 0x81d   :  { %2630 = vmatprep.subr.mxu1 %v2815_v42  ;;  %2665 = vmatprep.subr.mxu0 %v2816_v49 }
 0x81e   :  { %2631 = vmatpush3.msra.mxu1 %v2817_v52  ;;  %2666 = vmatpush3.msra.mxu0 %v2818_v53 }
 0x81f   :  { %2687 = vmatprep.subr.mxu1 %v4635_v56  ;;  %1851 = vmatprep.subr.mxu0 %v2819_v62 }
 0x820   :  { %1973 = vperm.xlu1 %2706, %v1240_v16  }
 0x8bf   :  { %v1524_v14 = vpop.f32.mrf.mxu1  ;;  %v1595_v13 = vpop.f32.mrf.mxu0 }
 0x8c0   :  { %v1600_v26 = vsub.f32 %v4202_v6, %v1524_v14  ;;  %v1602_v24 = vsub.f32 %v4206_v8, %v1595_v13 }
 0x8c1   :  { %v1526_v31 = vpop.f32.mrf.mxu1  ;;  %v1597_v25 = vpop.f32.mrf.mxu0 }
 0x8c2   :  { %v1601_v44 = vsub.f32 %v4200_v47, %v1526_v31  ;;  %v1603_v55 = vsub.f32 %v4204_v5, %v1597_v25  ;;  %v1604_v22 = vmul.f32 %v1600_v26, %v1600_v26  ;;  %v1606_v32 = vmul.f32 %v1602_v24, %v1602_v24  ;;  %v1974_v5 = vpop.permute.xlu1 %1973 }
 0x8c4   :  { %v1605_v59 = vmul.f32 %v1601_v44, %v1601_v44  ;;  %v1607_v0 = vmul.f32 %v1603_v55, %v1603_v55 }
 0x8c6   :  { %1672 = vmatprep.mubr.f32.mxu1 %v1605_v59  ;;  %1742 = vmatprep.mubr.f32.mxu0 %v1607_v0 }
 0x8c7   :  { %1673 = vmatmul.mubr.f32.vlgmr.msra.gmra.mxu1 %v1604_v22  ;;  %1743 = vmatmul.mubr.f32.vlgmr.msra.gmra.mxu0 %v1606_v32 }
 0x8c8   :  { %2689 = vmatprep.mubr.msk.f32.mxu1 %vm2850_vm0, %v4635_v56  ;;  %1852 = vmatpush1.msra.mxu0 %v2820_v33 }
 0x8c9   :  { %1885 = vmatprep.mubr.f32.mxu0 %v4635_v56 }
 0x987   :  { %v2632_v47 = vpop.f32.mrf.mxu1  ;;  %v2667_v34 = vpop.f32.mrf.mxu0 }
 0x989   :  { %v2633_v3 = vpop.f32.mrf.mxu1  ;;  %v2668_v15 = vpop.f32.mrf.mxu0 }
 0x98a   :  { %v2634_v17 = vadd.f32 %v2633_v3, %v2632_v47  ;;  %v2669_v20 = vadd.f32 %v2668_v15, %v2667_v34  ;;  %v4706_v34 = vld [vmem:[#allocation7_spill] sm:$0xff] }
 0x98c   :  { %v1745_v51 = vadd.f32 %v2669_v20, %v2634_v17  ;;  %v4707_v17 = vld [vmem:[#allocation6_spill] sm:$0xff] }
 0x98e   :  { %2688 = vmatpush3.msra.mxu1 %v1745_v51 }
 0x98f   :  { %2690 = vmatmul.mubr.msk.f32.vlgmr.msra.gmra.mxu1 %vm264_vm1, %v4220_v4  ;;  %1922 = vmatprep.subr.mxu1 %v2821_v1 }
 0x990   :  { %1923 = vmatpush1.msra.mxu1 %v2822_v12  ;;  %1956 = vmatprep.mubr.f32.mxu1 %v4635_v56  ;;  %v4708_v12 = vld [vmem:[#allocation8_spill] sm:$0xff] }
 0xa4f   :  { %v1814_v50 = vpop.f32.mrf.mxu1 }
 0xa50   :  { %2376 = vmatmul.mubr.msk.f32.vlgmr.msra.gmra.mxu0 %vm264_vm1, %v1814_v50  ;;  %2377 = vmatmul.mubr.msk.f32.vlgmr.msra.gmra.mxu1 %vm264_vm1, %v1814_v50  ;;  %v4709_v50 = vld [vmem:[#allocation9_spill] sm:$0xff] }
 0xa51   :  { %v2691_v29 = vpop.f32.mrf.mxu1  ;;  %2223 = vmatprep.mubr.f32.mxu0 %v4635_v56  ;;  %2294 = vmatprep.mubr.f32.mxu1 %v4635_v56 }
 0xb10   :  { %v1887_v23 = vpop.f32.mrf.mxu0  ;;  %v1958_v21 = vpop.f32.mrf.mxu1 }
 0xb11   :  { %v1888_v28 = vadd.f32 1e-05, %v1887_v23  ;;  %v1959_v36 = vadd.f32 1e-05, %v1958_v21 }
 0xb12   :  { %v1889_v37 = vpop.f32.mrf.mxu0  ;;  %v1960_v43 = vpop.f32.mrf.mxu1 }
 0xb13   :  { %2731 = vrsqrt.f32 %v1888_v28  ;;  %v1890_v45 = vadd.f32 1e-05, %v1889_v37  ;;  %v1961_v48 = vadd.f32 1e-05, %v1960_v43  ;;  %v4710_v43 = vld [vmem:[#allocation11_spill] sm:$0xff] }
 0xb14   :  { %2733 = vrsqrt.f32 %v1959_v36 }
 0xb15   :  { %2735 = vrsqrt.f32 %v1890_v45 }
 0xb16   :  { %2737 = vrsqrt.f32 %v1961_v48 }
 0xb20   :  { %v2732_v6 = vpop.eup %2731 }
 0xb21   :  { %v2734_v8 = vpop.eup %2733  ;;  %v1967_v63 = vmul.f32 %v2732_v6, %v1600_v26  ;;  %v4711_v6 = vld [vmem:[#allocation10_spill] sm:$0xff] }
 0xb22   :  { %v2736_v7 = vpop.eup %2735  ;;  %v1969_v9 = vmul.f32 %v2734_v8, %v1602_v24 }
 0xb23   :  { %v2738_v35 = vpop.eup %2737  ;;  %v1968_v56 = vmul.f32 %v2736_v7, %v1601_v44  ;;  %v1976_v38 = vmul.f32 %v1974_v5, %v1967_v63  ;;  %v4712_v7 = vld [vmem:[#allocation12_spill] sm:$0xff] }
 0xb24   :  { %v1970_v2 = vmul.f32 %v2738_v35, %v1603_v55  ;;  %v1978_v4 = vmul.f32 %v1974_v5, %v1969_v9  ;;  %v2018_v55 = vld [vmem:[%s4546_s10] sm:$0xff] }
 0xb25   :  { %v1977_v57 = vmul.f32 %v1974_v5, %v1968_v56  ;;  %v1985_v40 = vadd.f32 %v1983_v39, %v1976_v38  ;;  %v4713_v35 = vld [vmem:[#allocation13_spill] sm:$0xff] }
 0xb26   :  { %v1979_v61 = vmul.f32 %v1974_v5, %v1970_v2  ;;  %v1987_v58 = vadd.f32 %v1983_v39, %v1978_v4 }
 0xb27   :  { %v1986_v27 = vadd.f32 %v1983_v39, %v1977_v57  ;;  %v2378_v30 = vmul.f32 -1.442695, %v1985_v40 }
 0xb28   :  { %v1988_v19 = vadd.f32 %v1983_v39, %v1979_v61  ;;  %v2380_v18 = vmul.f32 -1.442695, %v1987_v58 }
 0xb29   :  { %2739 = vpow2.f32 %v2378_v30  ;;  %v2379_v10 = vmul.f32 -1.442695, %v1986_v27 }
 0xb2a   :  { %2741 = vpow2.f32 %v2380_v18  ;;  %v2381_v11 = vmul.f32 -1.442695, %v1988_v19 }
 0xb2b   :  { %2743 = vpow2.f32 %v2379_v10  ;;  %v4716_v10 = vld [vmem:[#allocation18_spill] sm:$0xff] }
 0xb2c   :  { %2745 = vpow2.f32 %v2381_v11 }
 0xb36   :  { %v2740_v46 = vpop.eup %2739 }
 0xb37   :  { %v2742_v54 = vpop.eup %2741  ;;  %v2001_v60 = vadd.f32 1.0, %v2740_v46  ;;  %v4717_v46 = vld [vmem:[#allocation14_spill] sm:$0xff] }
 0xb38   :  { %v2744_v41 = vpop.eup %2743  ;;  %v2003_v42 = vadd.f32 1.0, %v2742_v54 }
 0xb39   :  { %v2746_v49 = vpop.eup %2745  ;;  %v2002_v52 = vadd.f32 1.0, %v2744_v41  ;;  %2747 = vrcp.f32 %v2001_v60 }
 0xb3a   :  { %v2004_v53 = vadd.f32 1.0, %v2746_v49  ;;  %2749 = vrcp.f32 %v2003_v42 }
 0xb3b   :  { %2751 = vrcp.f32 %v2002_v52 }
 0xb3c   :  { %2753 = vrcp.f32 %v2004_v53  ;;  %v4718_v53 = vld [vmem:[#allocation19_spill] sm:$0xff] }
 0xb46   :  { %v2748_v62 = vpop.eup %2747 }
 0xb47   :  { %v2750_v14 = vpop.eup %2749  ;;  %v4336_v13 = vmul.f32 %v2748_v62, %v1985_v40  ;;  %v4714_v40 = vld [vmem:[#allocation17_spill] sm:$0xff] }
 0xb48   :  { %v2752_v26 = vpop.eup %2751  ;;  %v4342_v25 = vmul.f32 %v2750_v14, %v1987_v58 }
 0xb49   :  { %v4338_v24 = vmul.f32 %v2752_v26, %v1986_v27  ;;  %2135 = vrot.lane.b32.xlu1 %v4336_v13, %s2852_s7  ;;  %v2754_v31 = vpop.eup %2753  ;;  %v4715_v27 = vld [vmem:[#allocation15_spill] sm:$0xff]  ;;  %v4719_v26 = vld [vmem:[#allocation16_spill] sm:$0xff] }
 0xb4a   :  { %v4346_v44 = vmul.f32 %v2754_v31, %v1988_v19 }
 0xb4b   :  { %2137 = vrot.lane.b32.xlu0 %v4338_v24, %s2852_s7 }
 0xb4d   :  { %2139 = vrot.lane.b32.xlu1 %v4342_v25, %s2852_s7 }
 0xb4f   :  { %2141 = vrot.lane.b32.xlu0 %v4346_v44, %s2852_s7 }
 0xb51   :  { %2119 = vrot.lane.b32.xlu1 %v4336_v13, %s2853_s8 }
 0xb53   :  { %2121 = vrot.lane.b32.xlu0 %v4338_v24, %s2853_s8 }
 0xb55   :  { %2123 = vrot.lane.b32.xlu1 %v4342_v25, %s2853_s8 }
 0xb57   :  { %2125 = vrot.lane.b32.xlu0 %v4346_v44, %s2853_s8 }
 0xb59   :  { %2103 = vrot.lane.b32.xlu1 %v4336_v13, %s2854_s18 }
 0xb5b   :  { %2105 = vrot.lane.b32.xlu0 %v4338_v24, %s2854_s18 }
 0xb5d   :  { %2107 = vrot.lane.b32.xlu1 %v4342_v25, %s2854_s18 }
 0xb5f   :  { %2109 = vrot.lane.b32.xlu0 %v4346_v44, %s2854_s18 }
 0xb61   :  { %2087 = vrot.lane.b32.xlu1 %v4336_v13, %s2855_s19 }
 0xb63   :  { %2089 = vrot.lane.b32.xlu0 %v4338_v24, %s2855_s19 }
 0xb65   :  { %2091 = vrot.lane.b32.xlu1 %v4342_v25, %s2855_s19 }
 0xb67   :  { %2093 = vrot.lane.b32.xlu0 %v4346_v44, %s2855_s19 }
 0xb69   :  { %2067 = vrot.lane.b32.xlu1 %v4336_v13, %s2856_s20 }
 0xb6b   :  { %2069 = vrot.lane.b32.xlu0 %v4338_v24, %s2856_s20 }
 0xb6d   :  { %2071 = vrot.lane.b32.xlu1 %v4342_v25, %s2856_s20 }
 0xb6f   :  { %2073 = vrot.lane.b32.xlu0 %v4346_v44, %s2856_s20 }
 0xb71   :  { %2051 = vrot.lane.b32.xlu1 %v4336_v13, %s2857_s21 }
 0xb73   :  { %2053 = vrot.lane.b32.xlu0 %v4338_v24, %s2857_s21 }
 0xb75   :  { %2055 = vrot.lane.b32.xlu1 %v4342_v25, %s2857_s21 }
 0xb77   :  { %2057 = vrot.lane.b32.xlu0 %v4346_v44, %s2857_s21 }
 0xb79   :  { %2035 = vrot.lane.b32.xlu1 %v4336_v13, %s2858_s22 }
 0xb7b   :  { %2037 = vrot.lane.b32.xlu0 %v4338_v24, %s2858_s22 }
 0xb7d   :  { %2039 = vrot.lane.b32.xlu1 %v4342_v25, %s2858_s22 }
 0xb7f   :  { %2041 = vrot.lane.b32.xlu0 %v4346_v44, %s2858_s22 }
 0xb81   :  { %2019 = vrot.lane.b32.xlu1 %v4336_v13, %s2859_s23 }
 0xb83   :  { %2021 = vrot.lane.b32.xlu0 %v4338_v24, %s2859_s23 }
 0xb85   :  { %2023 = vrot.lane.b32.xlu1 %v4342_v25, %s2859_s23 }
 0xb87   :  { %2025 = vrot.lane.b32.xlu0 %v4346_v44, %s2859_s23 }
 0xb89   :  { %2153 = vperm.xlu1 %2706, %v2018_v55  }
 0xbbb   :  { %v2136_v59 = vpop.permute.xlu1 %2135 }
 0xbbd   :  { %v2138_v0 = vpop.permute.xlu0 %2137 }
 0xbbe   :  { %v2145_v32 = vsel %vm1074_vm2, %v2136_v59, %v2138_v0 }
 0xbbf   :  { %v2140_v33 = vpop.permute.xlu1 %2139  ;;  %v2147_v20 = vmul.f32 %v4707_v17, %v2145_v32  ;;  %v4723_v17 = vld [vmem:[#allocation21_spill] sm:$0xff] }
 0xbc0   :  { %v2144_v47 = vsel %vm1074_vm2, %v2138_v0, %v2140_v33  ;;  %v4720_v0 = vld [vmem:[#allocation22_spill] sm:$0xff] }
 0xbc1   :  { %v2148_v3 = vmul.f32 %v4706_v34, %v2144_v47  ;;  %v2142_v15 = vpop.permute.xlu0 %2141 }
 0xbc2   :  { %v2143_v51 = vsel %vm1074_vm2, %v2140_v33, %v2142_v15  ;;  %v2146_v1 = vsel %vm1074_vm2, %v2142_v15, %v2136_v59  ;;  %v4721_v33 = vld [vmem:[#allocation23_spill] sm:$0xff] }
 0xbc3   :  { %v2149_v16 = vmul.f32 %v4708_v12, %v2143_v51  ;;  %v2150_v29 = vmul.f32 %v4709_v50, %v2146_v1  ;;  %2173 = vmatprep.subr.mxu0 %v2148_v3  ;;  %v2120_v23 = vpop.permute.xlu1 %2119  ;;  %v4722_v3 = vld [vmem:[#allocation20_spill] sm:$0xff]  ;;  %v4725_v50 = vld [vmem:[#allocation25_spill] sm:$0xff] }
 0xbc4   :  { %2174 = vmatpush1.msra.mxu0 %v2147_v20  ;;  %v2084_v15 = vmul.f32 %v4722_v3, %v4338_v24  ;;  %v2083_v20 = vmul.f32 %v4723_v17, %v4336_v13  ;;  %v4724_v1 = vld [vmem:[#allocation24_spill] sm:$0xff]  ;;  %v4739_v17 = vld [vmem:[#allocation39_spill] sm:$0xff] }
 0xbc5   :  { %2244 = vmatprep.subr.mxu1 %v2150_v29  ;;  %v2122_v21 = vpop.permute.xlu0 %2121  ;;  %v2086_v12 = vmul.f32 %v4724_v1, %v4346_v44  ;;  %v2085_v29 = vmul.f32 %v4725_v50, %v4342_v25 }
 0xbc6   :  { %2245 = vmatpush1.msra.mxu1 %v2149_v16  ;;  %v2129_v28 = vsel %vm1052_vm3, %v2120_v23, %v2122_v21 }
 0xbc7   :  { %v2124_v36 = vpop.permute.xlu1 %2123  ;;  %v2131_v5 = vmul.f32 %v4711_v6, %v2129_v28  ;;  %v4729_v6 = vld [vmem:[#allocation29_spill] sm:$0xff] }
 0xbc8   :  { %v2128_v37 = vsel %vm1052_vm3, %v2122_v21, %v2124_v36 }
 0xbc9   :  { %v2132_v45 = vmul.f32 %v4710_v43, %v2128_v37  ;;  %v2126_v48 = vpop.permute.xlu0 %2125  ;;  %v4727_v37 = vld [vmem:[#allocation27_spill] sm:$0xff] }
 0xbca   :  { %v2127_v8 = vsel %vm1052_vm3, %v2124_v36, %v2126_v48  ;;  %v2130_v63 = vsel %vm1052_vm3, %v2126_v48, %v2120_v23  ;;  %v4726_v23 = vld [vmem:[#allocation26_spill] sm:$0xff] }
 0xbcb   :  { %v2133_v9 = vmul.f32 %v4712_v7, %v2127_v8  ;;  %v2134_v56 = vmul.f32 %v4713_v35, %v2130_v63  ;;  %2175 = vmatprep.subr.mxu0 %v2132_v45  ;;  %v2104_v38 = vpop.permute.xlu1 %2103  ;;  %v4728_v45 = vld [vmem:[#allocation28_spill] sm:$0xff]  ;;  %v4730_v7 = vld [vmem:[#allocation30_spill] sm:$0xff] }
 0xbcc   :  { %2176 = vmatpush1.msra.mxu0 %v2131_v5 }
 0xbcd   :  { %v2106_v39 = vpop.permute.xlu0 %2105  ;;  %2246 = vmatprep.subr.mxu1 %v2134_v56 }
 0xbce   :  { %2247 = vmatpush1.msra.mxu1 %v2133_v9  ;;  %v2113_v2 = vsel %vm1030_vm4, %v2104_v38, %v2106_v39 }
 0xbcf   :  { %v2108_v4 = vpop.permute.xlu1 %2107  ;;  %v2115_v30 = vmul.f32 %v4715_v27, %v2113_v2  ;;  %v4733_v27 = vld [vmem:[#allocation33_spill] sm:$0xff] }
 0xbd0   :  { %v2112_v57 = vsel %vm1030_vm4, %v2106_v39, %v2108_v4 }
 0xbd1   :  { %v2116_v61 = vmul.f32 %v4714_v40, %v2112_v57  ;;  %v2110_v58 = vpop.permute.xlu0 %2109  ;;  %v4732_v40 = vld [vmem:[#allocation32_spill] sm:$0xff] }
 0xbd2   :  { %v2111_v19 = vsel %vm1030_vm4, %v2108_v4, %v2110_v58  ;;  %v2114_v18 = vsel %vm1030_vm4, %v2110_v58, %v2104_v38  ;;  %v4731_v4 = vld [vmem:[#allocation31_spill] sm:$0xff] }
 0xbd3   :  { %v2117_v11 = vmul.f32 %v4716_v10, %v2111_v19  ;;  %v2118_v54 = vmul.f32 %v4717_v46, %v2114_v18  ;;  %2177 = vmatprep.subr.mxu0 %v2116_v61  ;;  %v2088_v60 = vpop.permute.xlu1 %2087  ;;  %v4734_v10 = vld [vmem:[#allocation34_spill] sm:$0xff] }
 0xbd4   :  { %2178 = vmatpush1.msra.mxu0 %v2115_v30 }
 0xbd5   :  { %v2090_v41 = vpop.permute.xlu0 %2089  ;;  %2248 = vmatprep.subr.mxu1 %v2118_v54 }
 0xbd6   :  { %2249 = vmatpush1.msra.mxu1 %v2117_v11  ;;  %v2097_v42 = vsel %vm1008_vm5, %v2088_v60, %v2090_v41 }
 0xbd7   :  { %v2092_v49 = vpop.permute.xlu1 %2091  ;;  %v2099_v31 = vmul.f32 %v4719_v26, %v2097_v42  ;;  %v4737_v26 = vld [vmem:[#allocation37_spill] sm:$0xff] }
 0xbd8   :  { %v2096_v52 = vsel %vm1008_vm5, %v2090_v41, %v2092_v49 }
 0xbd9   :  { %v2100_v62 = vmul.f32 %v4718_v53, %v2096_v52  ;;  %v2094_v14 = vpop.permute.xlu0 %2093  ;;  %v4736_v53 = vld [vmem:[#allocation36_spill] sm:$0xff] }
 0xbda   :  { %v2095_v55 = vsel %vm1008_vm5, %v2092_v49, %v2094_v14  ;;  %v2098_v59 = vsel %vm1008_vm5, %v2094_v14, %v2088_v60  ;;  %v4735_v49 = vld [vmem:[#allocation35_spill] sm:$0xff] }
 0xbdb   :  { %v2101_v32 = vmul.f32 %v4720_v0, %v2095_v55  ;;  %v2102_v47 = vmul.f32 %v4721_v33, %v2098_v59  ;;  %2179 = vmatprep.subr.mxu0 %v2100_v62  ;;  %v2068_v34 = vpop.permute.xlu1 %2067  ;;  %v4738_v0 = vld [vmem:[#allocation38_spill] sm:$0xff] }
 0xbdc   :  { %2180 = vmatpush1.msra.mxu0 %v2099_v31 }
 0xbdd   :  { %v2070_v51 = vpop.permute.xlu0 %2069  ;;  %2181 = vmatprep.subr.mxu0 %v2084_v15  ;;  %2250 = vmatprep.subr.mxu1 %v2102_v47 }
 0xbde   :  { %v2077_v16 = vsel %vm977_vm6, %v2068_v34, %v2070_v51  ;;  %2182 = vmatpush1.msra.mxu0 %v2083_v20  ;;  %2251 = vmatpush1.msra.mxu1 %v2101_v32 }
 0xbdf   :  { %v2080_v24 = vmul.f32 %v4726_v23, %v2077_v16  ;;  %2252 = vmatprep.subr.mxu1 %v2086_v12  ;;  %v2072_v21 = vpop.permute.xlu1 %2071  ;;  %v2017_v12 = vld [vmem:[%s4545_s9] sm:$0xff]  ;;  %s2860_s9 = smov [#allocation2]  }
 0xbe0   :  { %2253 = vmatpush1.msra.mxu1 %v2085_v29  ;;  %v2076_v13 = vsel %vm977_vm6, %v2070_v51, %v2072_v21  ;;  %v4740_v51 = vld [vmem:[#allocation40_spill] sm:$0xff]  ;;  %v4741_v16 = vld [vmem:[#allocation41_spill] sm:$0xff]  ;;  %s2315_s19 = sshll.u32 %s2860_s9, 4  ;;  %s2316_s19 = int_to_ptr.vmem [resolvable:$true] %s2315_s19 }
 0xbe1   :  { %v2074_v28 = vpop.permute.xlu0 %2073  ;;  %2183 = vmatprep.subr.mxu0 %v2080_v24  ;;  %v2081_v5 = vmul.f32 %v4729_v6, %v2076_v13  ;;  %s2827_s27 = scalar_lea.vmem %s2316_s19, 512  ;;  %p2832_p1 = scmp.lt.s32.totalorder %s2316_s19, %s2316_s19 }
 0xbe2   :  { %v2075_v44 = vsel %vm977_vm6, %v2072_v21, %v2074_v28  ;;  %v2078_v36 = vsel %vm977_vm6, %v2074_v28, %v2068_v34  ;;  %v2823_v28 = vld [vmem:[%s4536_s0] sm:$0xff]  ;;  %p2828_p0 = scmp.ne.s32.totalorder %s2316_s19, %s2827_s27  ;;  %p2833_p2 = scmp.lt.s32.totalorder %s2827_s27, %s2827_s27 }
 0xbe3   :  { %v2079_v43 = vmul.f32 %v4727_v37, %v2078_v36  ;;  %v2082_v25 = vmul.f32 %v4728_v45, %v2075_v44  ;;  %v2052_v48 = vpop.permute.xlu1 %2051 }
 0xbe4   :  { %p2834_p3 = por %p2833_p2, %p2832_p1 }
 0xbe5   :  { %v2054_v8 = vpop.permute.xlu0 %2053  ;;  %2184 = vmatpush1.msra.mxu0 %v2079_v43  ;;  %2254 = vmatprep.subr.mxu1 %v2082_v25  ;;  %v2824_v43 = vld [vmem:[%s4536_s0 + $0x10] sm:$0xff] }
 0xbe6   :  { %v2061_v63 = vsel %vm955_vm7, %v2052_v48, %v2054_v8  ;;  %2255 = vmatpush1.msra.mxu1 %v2081_v5  ;;  %v2826_v5 = vld [vmem:[%s4536_s0 + $0x18] sm:$0xff]  ;;  %p2835_p4 = pnand %p2834_p3, %p2828_p0 }
 0xbe7   :  { %v2064_v9 = vmul.f32 %v4730_v7, %v2061_v63  ;;  %v2056_v35 = vpop.permute.xlu1 %2055 }
 0xbe8   :  { %v2060_v56 = vsel %vm955_vm7, %v2054_v8, %v2056_v35 }
 0xbe9   :  { %v2058_v38 = vpop.permute.xlu0 %2057  ;;  %2185 = vmatprep.subr.mxu0 %v2064_v9  ;;  %v2065_v30 = vmul.f32 %v4733_v27, %v2060_v56 }
 0xbea   :  { %v2059_v39 = vsel %vm955_vm7, %v2056_v35, %v2058_v38  ;;  %v2062_v2 = vsel %vm955_vm7, %v2058_v38, %v2052_v48  ;;  %v2825_v48 = vld [vmem:[%s4536_s0 + $0x8] sm:$0xff] }
 0xbeb   :  { %v2063_v57 = vmul.f32 %v4731_v4, %v2062_v2  ;;  %v2066_v61 = vmul.f32 %v4732_v40, %v2059_v39  ;;  %v2036_v58 = vpop.permute.xlu1 %2035 }
 0xbed   :  { %v2038_v19 = vpop.permute.xlu0 %2037  ;;  %2186 = vmatpush1.msra.mxu0 %v2063_v57  ;;  %2256 = vmatprep.subr.mxu1 %v2066_v61 }
 0xbee   :  { %v2045_v18 = vsel %vm933_vm8, %v2036_v58, %v2038_v19  ;;  %2257 = vmatpush1.msra.mxu1 %v2065_v30 }
 0xbef   :  { %v2048_v11 = vmul.f32 %v4734_v10, %v2045_v18  ;;  %v2040_v46 = vpop.permute.xlu1 %2039 }
 0xbf0   :  { %v2044_v54 = vsel %vm933_vm8, %v2038_v19, %v2040_v46 }
 0xbf1   :  { %v2042_v60 = vpop.permute.xlu0 %2041  ;;  %2187 = vmatprep.subr.mxu0 %v2048_v11  ;;  %v2049_v31 = vmul.f32 %v4737_v26, %v2044_v54 }
 0xbf2   :  { %v2043_v41 = vsel %vm933_vm8, %v2040_v46, %v2042_v60  ;;  %v2046_v42 = vsel %vm933_vm8, %v2042_v60, %v2036_v58 }
 0xbf3   :  { %v2047_v52 = vmul.f32 %v4735_v49, %v2046_v42  ;;  %v2050_v62 = vmul.f32 %v4736_v53, %v2043_v41  ;;  %v2020_v14 = vpop.permute.xlu1 %2019 }
 0xbf5   :  { %v2022_v55 = vpop.permute.xlu0 %2021  ;;  %2188 = vmatpush1.msra.mxu0 %v2047_v52  ;;  %2258 = vmatprep.subr.mxu1 %v2050_v62 }
 0xbf6   :  { %v2029_v59 = vsel %vm912_vm9, %v2020_v14, %v2022_v55  ;;  %2259 = vmatpush1.msra.mxu1 %v2049_v31 }
 0xbf7   :  { %v2032_v32 = vmul.f32 %v2029_v59, %v4738_v0  ;;  %v2024_v33 = vpop.permute.xlu1 %2023 }
 0xbf8   :  { %v2028_v47 = vsel %vm912_vm9, %v2022_v55, %v2024_v33 }
 0xbf9   :  { %v2026_v34 = vpop.permute.xlu0 %2025  ;;  %2189 = vmatprep.subr.mxu0 %v2032_v32  ;;  %v2033_v50 = vmul.f32 %v2028_v47, %v4741_v16 }
 0xbfa   :  { %v2027_v3 = vsel %vm912_vm9, %v2024_v33, %v2026_v34  ;;  %v2030_v15 = vsel %vm912_vm9, %v2026_v34, %v2020_v14 }
 0xbfb   :  { %v2031_v20 = vmul.f32 %v2030_v15, %v4739_v17  ;;  %v2034_v1 = vmul.f32 %v2027_v3, %v4740_v51 }
 0xbfd   :  { %2190 = vmatpush1.msra.mxu0 %v2031_v20  ;;  %2260 = vmatprep.subr.mxu1 %v2034_v1 }
 0xbfe   :  { %2382 = vmatmul.mubr.msk.f32.vlgmr.msra.gmra.mxu0 %vm1093_vm10, %v2017_v12  ;;  %2261 = vmatpush1.msra.mxu1 %v2033_v50 }
 0xbff   :  { %2383 = vmatmul.mubr.msk.f32.vlgmr.msra.gmra.mxu1 %vm1093_vm10, %v2017_v12 }
 0xc04   :  { %v2154_v29 = vpop.permute.xlu1 %2153 }
 0xcbe   :  { %v2225_v22 = vpop.f32.mrf.mxu0 }
 0xcbf   :  { %v2226_v23 = vadd.f32 %v2225_v22, %v2154_v29  ;;  %v2296_v24 = vpop.f32.mrf.mxu1 }
 0xcc0   :  { %v2297_v21 = vadd.f32 %v2296_v24, %v2154_v29  ;;  %v2227_v13 = vpop.f32.mrf.mxu0 }
 0xcc1   :  { %v2301_v44 = vadd.f32 %v2823_v28, %v2226_v23  ;;  %v2228_v36 = vadd.f32 %v2227_v13, %v2154_v29  ;;  %v2298_v37 = vpop.f32.mrf.mxu1 }
 0xcc2   :  { %v2303_v45 = vadd.f32 %v2824_v43, %v2297_v21  ;;  %v2299_v25 = vadd.f32 %v2298_v37, %v2154_v29 }
 0xcc3   :  { %2305 = vst [vmem:[#allocation2] sm:$0xff] %v2301_v44  ;;  %v2302_v6 = vadd.f32 %v2825_v48, %v2228_v36 }
 0xcc4   :  { %2308 = vst [vmem:[#allocation2 + $0x10] sm:$0xff] %v2303_v45  ;;  %v2304_v8 = vadd.f32 %v2826_v5, %v2299_v25 }
 0xcc5   :  { %2306 = vst [vmem:[#allocation2 + $0x8] sm:$0xff] %v2302_v6 }
 0xcc6   :  { %2309 = vst [vmem:[#allocation2 + $0x18] sm:$0xff] %v2304_v8 }
 0xcc7   :  { %2838 = shalt.err (!%p2835_p4)
}
 0xcc8   :  { %s2861_s5 = smov 256  }
 0xcc9   :  { %2321 = dma.vmem_to_hbm [thread:$0]  %s2316_s19, 512, %s4550_s14, [#allocation3], %s2861_s5, %s2861_s5, %s2858_s22  }
 0xcca   :  { %2847 = dma.done.wait [#allocation3], 512  }
 0xccb   :  { %2848 = vsyncadd [#allocation3], 4294966784 }
 0xccc   :  { %2325 = vsyncpa [#allocation3], 1 }

</bundles_post_ra>
